<compile_context>
chip_gen: v7x
topology: tpu7x:2x2x1
jax: 0.10.0
libtpu: 0.0.40
codegen_flags: <defaults>
</compile_context>

<pallas_src>
import numpy as np
import jax
import jax.numpy as jnp
from jax.experimental import pallas as pl
from jax.experimental.pallas import tpu as pltpu


def _round_up(n, m):
    return ((n + m - 1) // m) * m


def _make_fused_kernel(n_pad, e_pad):
    """One grid step == one (ProdLayer, SumLayer) pair of the circuit."""

    def kernel(x_in_ref, ptrs_ref, csr_ref, m_ref, out_ref, xbuf, iota_ref):
        l = pl.program_id(0)
        last = pl.num_programs(0) - 1

        @pl.when(l == 0)
        def _init():
            xbuf[...] = x_in_ref[...]
            # hoisted node-index iota: generated once, reused by every step
            iota_ref[...] = jax.lax.broadcasted_iota(
                jnp.int32, (n_pad, e_pad), 0)

        x = xbuf[...]                          # (1, n_pad)  f32 node values
        ptrs = ptrs_ref[0]                     # (1, e_pad)  i32 (pad = 0)
        csr = csr_ref[0]                       # (1, e_pad)  i32 (pad = -1)
        node_idx = iota_ref[...]               # (n_pad, e_pad) i32

        # -------- ProdLayer (layer 2l): gather x[ptrs] on the MXU -----------
        # one-hot 0/1 is exact in bf16; split x into 3 bf16 chunks so the
        # gather is exact with 3 single-pass matmuls (no f32 HIGHEST passes).
        onehot = (node_idx == ptrs).astype(jnp.float32).astype(jnp.bfloat16)
        x_hi = x.astype(jnp.bfloat16)
        r1 = x - x_hi.astype(jnp.float32)
        x_mid = r1.astype(jnp.bfloat16)
        r2 = r1 - x_mid.astype(jnp.float32)
        x_lo = r2.astype(jnp.bfloat16)
        g = (jnp.dot(x_hi, onehot, preferred_element_type=jnp.float32)
             + jnp.dot(x_mid, onehot, preferred_element_type=jnp.float32)
             + jnp.dot(x_lo, onehot, preferred_element_type=jnp.float32))
        # g: (1, e_pad) with g[e] == x[ptrs[e]] exactly (one non-zero / column)

        # -------- segmented product (identity = 1 outside each segment) ------
        # padded edges carry csr == -1 and never match any output row.
        v = jnp.where(node_idx == csr, g, jnp.float32(1.0))   # (n_pad, e_pad)
        # 128-wide chunk accumulator over the lane (edge) axis ...
        acc = v[:, 0:128]
        for c in range(1, e_pad // 128):
            acc = acc * v[:, c * 128:(c + 1) * 128]
        # ... then finish inside the vreg with XLU rotations
        shift = 64
        while shift >= 1:
            acc = acc * pltpu.roll(acc, shift=shift, axis=1)
            shift //= 2
        col = acc[:, 0:1]                                      # (n_pad, 1)

        # -------- SumLayer (layer 2l+1) fused with the col->row transpose ----
        # out_row[o] = sum_n col[n] * M[n, o]  ==  ones(1,n) @ (col * M)
        # (M = dense count matrix, bf16 in HBM, identity for a trailing prod
        #  layer with no following sum layer).
        m = m_ref[0].astype(jnp.float32)                       # (n_pad, n_pad)
        new_x = jnp.dot(jnp.ones((1, n_pad), jnp.float32), col * m,
                        preferred_element_type=jnp.float32,
                        precision=jax.lax.Precision.HIGHEST)   # (1, n_pad)

        xbuf[...] = new_x

        @pl.when(l == last)
        def _write():
            out_ref[...] = new_x

    return kernel


class KnowledgeModulePallas:
    """Pallas/TPU port of KnowledgeModule (semiring='real', probabilistic=False)."""

    def __init__(self, pointers, csrs, semiring="real", probabilistic=False):
        if semiring != "real" or probabilistic:
            raise NotImplementedError("only semiring='real', probabilistic=False")
        self.zero, self.one = 0.0, 1.0
        self._layers = []
        for i, (ptrs, csr_off) in enumerate(zip(pointers, csrs)):
            ptrs = np.asarray(ptrs, np.int32)
            csr_off = np.asarray(csr_off, np.int64)
            # unroll_csr: per-edge output index from CSR offsets
            csr_u = np.repeat(np.arange(len(csr_off) - 1),
                              np.diff(csr_off)).astype(np.int32)
            n_out = len(csr_off) - 1        # keep trailing empty segments
            self._layers.append((ptrs, csr_u, n_out, i % 2 == 0))
        self._cache = {}                    # keyed by encoded-input width

    # ------------------------------------------------------------------ build
    def _build(self, n_input):
        layers = self._layers
        num_layers = len(layers)
        num_steps = (num_layers + 1) // 2
        widths = [n_input] + [n_out for (_, _, n_out, _) in layers]
        n_pad = _round_up(max(widths), 128)
        # edge padding: multiple of 128 (not next_pow2), prod layers only
        max_e = max(len(layers[2 * s][0]) for s in range(num_steps))
        e_pad = max(128, _round_up(max_e, 128))

        ptrs_all = np.zeros((num_steps, 1, e_pad), np.int32)
        csr_all = np.full((num_steps, 1, e_pad), -1, np.int32)
        m_all = np.zeros((num_steps, n_pad, n_pad), np.float32)
        for s in range(num_steps):
            p_ptrs, p_csr, _, p_is_prod = layers[2 * s]
            assert p_is_prod, "layer alternation violated (even layer not prod)"
            e = len(p_ptrs)
            ptrs_all[s, 0, :e] = p_ptrs
            csr_all[s, 0, :e] = p_csr
            li = 2 * s + 1
            if li < num_layers:
                s_ptrs, s_csr, _, s_is_prod = layers[li]
                assert not s_is_prod, "layer alternation violated (odd layer not sum)"
                np.add.at(m_all[s], (s_ptrs, s_csr), 1.0)
            else:
                # trailing prod layer with no following sum: identity matrix
                np.fill_diagonal(m_all[s], 1.0)

        # bf16 count matrices are exact for edge multiplicities < 256
        max_cnt = float(m_all.max()) if m_all.size else 0.0
        m_dtype = jnp.bfloat16 if max_cnt < 256.0 else jnp.float32
        m_bytes = 2 if m_dtype == jnp.bfloat16 else 4

        n_out_last = layers[-1][2]

        kernel = _make_fused_kernel(n_pad, e_pad)

        # VMEM budget: double-buffered blocks + scratches + in-body temporaries
        block_bytes = 2 * (n_pad * 4 + 2 * e_pad * 4 + n_pad * n_pad * m_bytes) \
            + 2 * n_pad * 4
        scratch_bytes = n_pad * 4 + n_pad * e_pad * 4
        temp_bytes = n_pad * e_pad * (4 + 2 + 4) + n_pad * n_pad * 8
        vmem_limit = int(min(128 * 2 ** 20,
                             max(32 * 2 ** 20,
                                 1.5 * (block_bytes + scratch_bytes + temp_bytes))))

        call = pl.pallas_call(
            kernel,
            out_shape=jax.ShapeDtypeStruct((1, n_pad), jnp.float32),
            grid=(num_steps,),
            in_specs=[
                pl.BlockSpec((1, n_pad), lambda l: (0, 0)),
                pl.BlockSpec((1, 1, e_pad), lambda l: (l, 0, 0)),
                pl.BlockSpec((1, 1, e_pad), lambda l: (l, 0, 0)),
                pl.BlockSpec((1, n_pad, n_pad), lambda l: (l, 0, 0)),
            ],
            out_specs=pl.BlockSpec((1, n_pad), lambda l: (0, 0)),
            scratch_shapes=[pltpu.VMEM((1, n_pad), jnp.float32),
                            pltpu.VMEM((n_pad, e_pad), jnp.int32)],
            compiler_params=pltpu.CompilerParams(
                dimension_semantics=("arbitrary",),
                vmem_limit_bytes=vmem_limit),
        )

        zero, one = self.zero, self.one

        @jax.jit
        def forward(weights, neg_weights, ptrs_d, csr_d, m_d):
            # encode_input: [zero, one, p0, n0, p1, n1, ...]
            x0 = jnp.concatenate([
                jnp.array([zero, one], jnp.float32),
                jnp.stack([weights, neg_weights], axis=1).reshape(-1),
            ])
            x_in = jnp.zeros((1, n_pad), jnp.float32).at[0, :x0.shape[0]].set(x0)
            out = call(x_in, ptrs_d, csr_d, m_d)
            return out[0, :n_out_last]

        arrays = (jnp.asarray(ptrs_all), jnp.asarray(csr_all),
                  jnp.asarray(m_all, dtype=m_dtype))
        return forward, arrays

    # --------------------------------------------------------------- forward
    def __call__(self, weights, neg_weights=None, eps=0.0):
        weights = jnp.asarray(weights, jnp.float32)
        if neg_weights is None:
            neg_weights = 1.0 - weights                       # negate_real
        neg_weights = jnp.asarray(neg_weights, jnp.float32)
        n_input = 2 + 2 * int(weights.shape[0])
        if n_input not in self._cache:
            self._cache[n_input] = self._build(n_input)
        forward, arrays = self._cache[n_input]
        return forward(weights, neg_weights, *arrays)


def reference_forward(pointers, csrs, weights):
    """Pure-numpy reference matching the PyTorch semantics."""
    w = np.asarray(weights, np.float64)
    x = np.concatenate([[0.0, 1.0], np.stack([w, 1.0 - w], axis=1).reshape(-1)])
    for i, (ptrs, csr_off) in enumerate(zip(pointers, csrs)):
        ptrs = np.asarray(ptrs)
        csr_off = np.asarray(csr_off)
        csr_u = np.repeat(np.arange(len(csr_off) - 1), np.diff(csr_off))
        src = x[ptrs]
        n_out = len(csr_off) - 1
        if i % 2 == 0:
            out = np.ones(n_out)
            for e, o in enumerate(csr_u):
                out[o] *= src[e]
        else:
            out = np.zeros(n_out)
            for e, o in enumerate(csr_u):
                out[o] += src[e]
        x = out
    return x


if __name__ == "__main__":
    # Small synthetic circuit over 4 boolean variables.
    # Encoded input indices: 0=zero, 1=one, 2=w0, 3=!w0, 4=w1, 5=!w1,
    #                        6=w2, 7=!w2, 8=w3, 9=!w3
    pointers = [
        # layer 0 (ProdLayer): 6 product nodes
        [2, 4, 2, 5, 3, 6, 7, 8, 6, 8, 3, 1],
        # layer 1 (SumLayer): 3 sum nodes
        [0, 1, 2, 3, 4, 5],
        # layer 2 (ProdLayer): 2 product nodes
        [0, 1, 1, 2],
    ]
    csrs = [
        [0, 2, 4, 6, 8, 11, 12],
        [0, 2, 5, 6],
        [0, 2, 4],
    ]

    module = KnowledgeModulePallas(pointers, csrs, semiring="real",
                                   probabilistic=False)

    key = jax.random.PRNGKey(0)
    weights = jax.random.uniform(key, (4,), dtype=jnp.float32)   # nb_vars = 4

    out = jax.block_until_ready(module(weights))
    out2 = jax.block_until_ready(module(weights))   # cache hit: no rebuild

    ref = reference_forward(pointers, csrs, np.asarray(weights))
    np.testing.assert_allclose(np.asarray(out), ref, rtol=1e-5, atol=1e-6)
    np.testing.assert_allclose(np.asarray(out2), ref, rtol=1e-5, atol=1e-6)

    print("KERNEL_OK")
</pallas_src>

<mosaic_0001>
module attributes {stable_mosaic.version = 11 : i64} {
  func.func @kernel(%arg0: i32, %arg1: memref<1x128xf32, #tpu.memory_space<vmem>>, %arg2: memref<1x1x128xi32, #tpu.memory_space<vmem>>, %arg3: memref<1x1x128xi32, #tpu.memory_space<vmem>>, %arg4: memref<1x128x128xbf16, #tpu.memory_space<vmem>>, %arg5: memref<1x128xf32, #tpu.memory_space<vmem>>, %arg6: memref<1x128xf32, #tpu.memory_space<vmem>>, %arg7: memref<128x128xi32, #tpu.memory_space<vmem>>) attributes {dimension_semantics = [#tpu.dimension_semantics<arbitrary>], iteration_bounds = array<i64: 2>, scalar_prefetch = 0 : i64, scratch_operands = 2 : i64, tpu.core_type = #tpu.core_type<tc>, window_params = [{pipeline_mode = #tpu.pipeline_mode<synchronous>, transform_indices = @transform_0, window_bounds = array<i64: 1, 128>}, {transform_indices = @transform_1, window_bounds = array<i64: 1, 1, 128>}, {transform_indices = @transform_2, window_bounds = array<i64: 1, 1, 128>}, {transform_indices = @transform_3, window_bounds = array<i64: 1, 128, 128>}, {pipeline_mode = #tpu.pipeline_mode<synchronous>, transform_indices = @transform_4, window_bounds = array<i64: 1, 128>}]} {
    %c0_i32 = arith.constant 0 : i32
    %0 = arith.cmpi eq, %arg0, %c0_i32 : i32
    %1 = arith.extui %0 : i1 to i32
    %c0_i32_0 = arith.constant 0 : i32
    %2 = arith.cmpi ne, %1, %c0_i32_0 : i32
    scf.if %2 {
      %c0_22 = arith.constant 0 : index
      %c0_23 = arith.constant 0 : index
      %58 = vector.load %arg1[%c0_22, %c0_23] : memref<1x128xf32, #tpu.memory_space<vmem>>, vector<1x128xf32>
      %c0_24 = arith.constant 0 : index
      %c0_25 = arith.constant 0 : index
      %59 = vector.load %arg6[%c0_24, %c0_25] : memref<1x128xf32, #tpu.memory_space<vmem>>, vector<1x128xf32>
      tpu.vector_store %arg6[%c0_24, %c0_25], %58 {strides = array<i32>} : memref<1x128xf32, #tpu.memory_space<vmem>>, vector<1x128xf32>,
      %60 = tpu.iota {dimensions = array<i32: 0>} : vector<128x128xi32>
      %c0_26 = arith.constant 0 : index
      %c0_27 = arith.constant 0 : index
      %61 = vector.load %arg7[%c0_26, %c0_27] : memref<128x128xi32, #tpu.memory_space<vmem>>, vector<128x128xi32>
      tpu.vector_store %arg7[%c0_26, %c0_27], %60 {strides = array<i32>} : memref<128x128xi32, #tpu.memory_space<vmem>>, vector<128x128xi32>,
    } else {
    }
    %c0 = arith.constant 0 : index
    %c0_1 = arith.constant 0 : index
    %3 = vector.load %arg6[%c0, %c0_1] : memref<1x128xf32, #tpu.memory_space<vmem>>, vector<1x128xf32>
    %c0_2 = arith.constant 0 : index
    %c0_3 = arith.constant 0 : index
    %c0_4 = arith.constant 0 : index
    %4 = vector.load %arg2[%c0_2, %c0_3, %c0_4] : memref<1x1x128xi32, #tpu.memory_space<vmem>>, vector<1x1x128xi32>
    %5 = vector.shape_cast %4 : vector<1x1x128xi32> to vector<1x128xi32>
    %c0_5 = arith.constant 0 : index
    %c0_6 = arith.constant 0 : index
    %c0_7 = arith.constant 0 : index
    %6 = vector.load %arg3[%c0_5, %c0_6, %c0_7] : memref<1x1x128xi32, #tpu.memory_space<vmem>>, vector<1x1x128xi32>
    %7 = vector.shape_cast %6 : vector<1x1x128xi32> to vector<1x128xi32>
    %c0_8 = arith.constant 0 : index
    %c0_9 = arith.constant 0 : index
    %8 = vector.load %arg7[%c0_8, %c0_9] : memref<128x128xi32, #tpu.memory_space<vmem>>, vector<128x128xi32>
    %9 = vector.broadcast %5 : vector<1x128xi32> to vector<128x128xi32>
    %10 = arith.cmpi eq, %8, %9 : vector<128x128xi32>
    %11 = arith.extui %10 : vector<128x128xi1> to vector<128x128xi32>
    %12 = arith.sitofp %11 : vector<128x128xi32> to vector<128x128xf32>
    %13 = arith.truncf %12 : vector<128x128xf32> to vector<128x128xbf16>
    %14 = arith.truncf %3 : vector<1x128xf32> to vector<1x128xbf16>
    %15 = arith.extf %14 : vector<1x128xbf16> to vector<1x128xf32>
    %16 = arith.subf %3, %15 : vector<1x128xf32>
    %17 = arith.truncf %16 : vector<1x128xf32> to vector<1x128xbf16>
    %18 = arith.extf %17 : vector<1x128xbf16> to vector<1x128xf32>
    %19 = arith.subf %16, %18 : vector<1x128xf32>
    %20 = arith.truncf %19 : vector<1x128xf32> to vector<1x128xbf16>
    %cst = arith.constant dense<0.000000e+00> : vector<1x128xf32>
    %21 = tpu.matmul %14, %13, %cst {dimension_numbers = #tpu.dot_dimension_numbers<[1], [0], [0], [1], [0, 0, 1, 1], [], []>} : vector<1x128xbf16>, vector<128x128xbf16>, vector<1x128xf32> -> vector<1x128xf32>
    %cst_10 = arith.constant dense<0.000000e+00> : vector<1x128xf32>
    %22 = tpu.matmul %17, %13, %cst_10 {dimension_numbers = #tpu.dot_dimension_numbers<[1], [0], [0], [1], [0, 0, 1, 1], [], []>} : vector<1x128xbf16>, vector<128x128xbf16>, vector<1x128xf32> -> vector<1x128xf32>
    %23 = arith.addf %21, %22 : vector<1x128xf32>
    %cst_11 = arith.constant dense<0.000000e+00> : vector<1x128xf32>
    %24 = tpu.matmul %20, %13, %cst_11 {dimension_numbers = #tpu.dot_dimension_numbers<[1], [0], [0], [1], [0, 0, 1, 1], [], []>} : vector<1x128xbf16>, vector<128x128xbf16>, vector<1x128xf32> -> vector<1x128xf32>
    %25 = arith.addf %23, %24 : vector<1x128xf32>
    %26 = vector.broadcast %7 : vector<1x128xi32> to vector<128x128xi32>
    %27 = arith.cmpi eq, %8, %26 : vector<128x128xi32>
    %cst_12 = arith.constant 1.000000e+00 : f32
    %28 = vector.shape_cast %25 : vector<1x128xf32> to vector<1x128xf32>
    %29 = vector.broadcast %28 : vector<1x128xf32> to vector<128x128xf32>
    %30 = vector.broadcast %cst_12 : f32 to vector<128x128xf32>
    %31 = arith.select %27, %29, %30 : vector<128x128xi1>, vector<128x128xf32>
    %c64_i32 = arith.constant 64 : i32
    %32 = tpu.dynamic_rotate %31 by %c64_i32 dim 1 : vector<128x128xf32>, i32 -> vector<128x128xf32>
    %33 = arith.mulf %31, %32 : vector<128x128xf32>
    %c32_i32 = arith.constant 32 : i32
    %34 = tpu.dynamic_rotate %33 by %c32_i32 dim 1 : vector<128x128xf32>, i32 -> vector<128x128xf32>
    %35 = arith.mulf %33, %34 : vector<128x128xf32>
    %c16_i32 = arith.constant 16 : i32
    %36 = tpu.dynamic_rotate %35 by %c16_i32 dim 1 : vector<128x128xf32>, i32 -> vector<128x128xf32>
    %37 = arith.mulf %35, %36 : vector<128x128xf32>
    %c8_i32 = arith.constant 8 : i32
    %38 = tpu.dynamic_rotate %37 by %c8_i32 dim 1 : vector<128x128xf32>, i32 -> vector<128x128xf32>
    %39 = arith.mulf %37, %38 : vector<128x128xf32>
    %c4_i32 = arith.constant 4 : i32
    %40 = tpu.dynamic_rotate %39 by %c4_i32 dim 1 : vector<128x128xf32>, i32 -> vector<128x128xf32>
    %41 = arith.mulf %39, %40 : vector<128x128xf32>
    %c2_i32 = arith.constant 2 : i32
    %42 = tpu.dynamic_rotate %41 by %c2_i32 dim 1 : vector<128x128xf32>, i32 -> vector<128x128xf32>
    %43 = arith.mulf %41, %42 : vector<128x128xf32>
    %c1_i32 = arith.constant 1 : i32
    %44 = tpu.dynamic_rotate %43 by %c1_i32 dim 1 : vector<128x128xf32>, i32 -> vector<128x128xf32>
    %45 = arith.mulf %43, %44 : vector<128x128xf32>
    %46 = vector.extract_strided_slice %45 {offsets = [0, 0], sizes = [128, 1], strides = [1, 1]} : vector<128x128xf32> to vector<128x1xf32>
    %c0_13 = arith.constant 0 : index
    %c0_14 = arith.constant 0 : index
    %c0_15 = arith.constant 0 : index
    %47 = vector.load %arg4[%c0_13, %c0_14, %c0_15] : memref<1x128x128xbf16, #tpu.memory_space<vmem>>, vector<1x128x128xbf16>
    %48 = vector.shape_cast %47 : vector<1x128x128xbf16> to vector<128x128xbf16>
    %49 = arith.extf %48 : vector<128x128xbf16> to vector<128x128xf32>
    %cst_16 = arith.constant 1.000000e+00 : f32
    %50 = vector.broadcast %cst_16 : f32 to vector<1x128xf32>
    %51 = vector.broadcast %46 : vector<128x1xf32> to vector<128x128xf32>
    %52 = arith.mulf %51, %49 : vector<128x128xf32>
    %cst_17 = arith.constant dense<0.000000e+00> : vector<1x128xf32>
    %53 = tpu.matmul %50, %52, %cst_17 {dimension_numbers = #tpu.dot_dimension_numbers<[1], [0], [0], [1], [0, 0, 1, 1], [], []>, precision = #tpu.contract_precision<fp32>} : vector<1x128xf32>, vector<128x128xf32>, vector<1x128xf32> -> vector<1x128xf32>
    %c0_18 = arith.constant 0 : index
    %c0_19 = arith.constant 0 : index
    %54 = vector.load %arg6[%c0_18, %c0_19] : memref<1x128xf32, #tpu.memory_space<vmem>>, vector<1x128xf32>
    tpu.vector_store %arg6[%c0_18, %c0_19], %53 {strides = array<i32>} : memref<1x128xf32, #tpu.memory_space<vmem>>, vector<1x128xf32>,
    %c1_i32_20 = arith.constant 1 : i32
    %55 = arith.cmpi eq, %arg0, %c1_i32_20 : i32
    %56 = arith.extui %55 : i1 to i32
    %c0_i32_21 = arith.constant 0 : i32
    %57 = arith.cmpi ne, %56, %c0_i32_21 : i32
    scf.if %57 {
      %c0_22 = arith.constant 0 : index
      %c0_23 = arith.constant 0 : index
      %58 = vector.load %arg5[%c0_22, %c0_23] : memref<1x128xf32, #tpu.memory_space<vmem>>, vector<1x128xf32>
      tpu.vector_store %arg5[%c0_22, %c0_23], %53 {strides = array<i32>} : memref<1x128xf32, #tpu.memory_space<vmem>>, vector<1x128xf32>,
    } else {
    }
    return
  }
  func.func @transform_0(%arg0: i32) -> (i32, i32) {
    %c0_i32 = arith.constant 0 : i32
    %c0_i32_0 = arith.constant 0 : i32
    %c0_i32_1 = arith.constant 0 : i32
    return %c0_i32, %c0_i32_0 : i32, i32
  }
  func.func @transform_1(%arg0: i32) -> (i32, i32, i32) {
    %c0_i32 = arith.constant 0 : i32
    %c0_i32_0 = arith.constant 0 : i32
    %c0_i32_1 = arith.constant 0 : i32
    return %arg0, %c0_i32, %c0_i32_0 : i32, i32, i32
  }
  func.func @transform_2(%arg0: i32) -> (i32, i32, i32) {
    %c0_i32 = arith.constant 0 : i32
    %c0_i32_0 = arith.constant 0 : i32
    %c0_i32_1 = arith.constant 0 : i32
    return %arg0, %c0_i32, %c0_i32_0 : i32, i32, i32
  }
  func.func @transform_3(%arg0: i32) -> (i32, i32, i32) {
    %c0_i32 = arith.constant 0 : i32
    %c0_i32_0 = arith.constant 0 : i32
    %c0_i32_1 = arith.constant 0 : i32
    return %arg0, %c0_i32, %c0_i32_0 : i32, i32, i32
  }
  func.func @transform_4(%arg0: i32) -> (i32, i32) {
    %c0_i32 = arith.constant 0 : i32
    %c0_i32_0 = arith.constant 0 : i32
    %c0_i32_1 = arith.constant 0 : i32
    return %c0_i32, %c0_i32_0 : i32, i32
  }
}

</mosaic_0001>

<bundles_post_ra>
// kernel: forward.1
= control target key start
LH: loop header
LB: loop body
LE: loop exit
PB: predicated region body
PF: predicated region fallthrough
CT: control target
= control target key end

     0   :  { %9 = vsyncpa [#allocation5], 0  ;;  %s3193_s0 = inlined_call_operand.vmem [shape: f32[1,128], index: 0, kind: input, shape index: {}]   ;;  %s3194_s1 = inlined_call_operand.vmem [shape: s32[2,1,128], index: 1, kind: input, shape index: {}]   ;;  %s3195_s2 = inlined_call_operand.vmem [shape: s32[2,1,128], index: 2, kind: input, shape index: {}]   ;;  %s3196_s3 = inlined_call_operand.hbm [shape: bf16[2,128,128], index: 3, kind: input, shape index: {}]   ;;  %s3197_s4 = inlined_call_operand.vmem [shape: f32[1,128], index: 4, kind: output, shape index: {}]  }
   0x1   :  { %11 = vsyncpa [#allocation5 + $0x1], 0  ;;  %s2514_s15 = smov 0   ;;  %s2516_s16 = smov 0  }
   0x2   :  { %s2518_s17 = smov 0   ;;  %s2520_s18 = smov 0  }
   0x3 LB: > { %s2533_s19 = sadd.s32 4294967295, %s2471_s18   ;;  %s2536_s20 = sadd.s32 1, %s2471_s18   ;;  %s2471_s18 = sphi %s2520_s18, %s3220_s18   ;;  %s2467_s17 = sphi %s2518_s17, %s3219_s17   ;;  %s2463_s16 = sphi %s2516_s16, %s3218_s16   ;;  %s2459_s15 = sphi %s2514_s15, %s3217_s15  }
   0x4   : > { %s94_s21 = ssub.s32 %s2471_s18, %s2536_s20  ;;  %s97_s22 = sadd.s32 1, %s2467_s17 }
   0x5   : > { %p95_p0 = scmp.eq.s32.totalorder %s94_s21, 0  ;;  %p104_p1 = scmp.ne.s32.totalorder %s2467_s17, %s2463_s16 }
   0x6   : > { %p105_p2 = scmp.eq.s32.totalorder %s2471_s18, 0  ;;  %p110_p3 = scmp.ne.s32.totalorder %s2463_s16, %s2459_s15 }
   0x7   : > { %s2546_s23 = scalar_select %p95_p0, %s2467_s17, %s97_s22  }
   0x8   : > { %p106_p4 = por %p105_p2, %p104_p1  ;;  %p111_p5 = scmp.eq.s32.totalorder %s2533_s19, 0 }
   0x9   : > { %p2357_p6 = scmp.lt.s32.totalorder %s2471_s18, 2  ;;  %s170_s25 = sand.u32 1, %s2467_s17  }
   0xa   : > { %p2550_p7 = por %p111_p5, %p110_p3  ;;  %s1676_s26 = sshll.u32 %s170_s25, 6 }
   0xb   : > { %s1751_s27 = sshll.u32 %s2471_s18, 10  ;;  %s174_s5 = scalar_lea.vmem [#allocation4], %s1676_s26 }
   0xc   : > { %s2559_s30 = scalar_lea.hbm %s3196_s3, %s1751_s27  ;;  %s181_s6 = sshll.u32 %s174_s5, 4  ;;  %s2561_s6 = int_to_ptr.vmem [resolvable:$true] %s181_s6 }
   0xd   : > { %p2563_p8 = pnand %p2357_p6, %p106_p4  ;;  %s2568_s8 = scalar_lea.sflag [#allocation5], %s170_s25 }
   0xe   : > { %s2407_s9 = scalar_lea.hbm %s2559_s30, 1024  ;;  %s2412_s12 = scalar_lea.hbm %s3196_s3, 2048 }
   0xf   : > { %p2408_p10 = scmp.ne.s32.totalorder %s2559_s30, %s2407_s9  ;;  %p2409_p11 = pneg %p2563_p8 }
  0x10   : > { %p2413_p0 = scmp.lt.u32.totalorder %s2559_s30, %s3196_s3  ;;  %p2414_p1 = scmp.lt.u32.totalorder %s2412_s12, %s2407_s9 }
  0x11   : > { %p2410_p12 = pnand %p2409_p11, %p2408_p10  ;;  %p2416_p3 = scmp.lt.u32.totalorder %s2407_s9, %s2559_s30 }
  0x12   : > { %p2415_p2 = por %p2414_p1, %p2413_p0 }
  0x13   : > { %p2411_p13 = pneg %p2410_p12 }
  0x14   : > { %p2417_p4 = por %p2416_p3, %p2415_p2 }
  0x16   : > { %p2418_p5 = pnand %p2417_p4, %p2411_p13 }
  0x18   : > { %2421 = shalt.err (!%p2418_p5)
}
  0x19   : > { %s2422_s15 = scalar_lea.vmem %s2561_s6, 1024  ;;  %s2473_s21 = smov [#allocation4]  }
  0x1a   : > { %p2423_p6 = scmp.ne.s32.totalorder %s2561_s6, %s2422_s15  ;;  %s2427_s22 = sshll.u32 %s2473_s21, 4  ;;  %s2428_s22 = int_to_ptr.vmem [resolvable:$false] %s2427_s22 }
  0x1b   : > { %s2429_s25 = scalar_lea.vmem %s2428_s22, 2048  ;;  %p2430_p9 = scmp.lt.s32.totalorder %s2561_s6, %s2428_s22 }
  0x1c   : > { %p2425_p10 = pnand %p2423_p6, %p2409_p11  ;;  %p2431_p0 = scmp.lt.s32.totalorder %s2429_s25, %s2422_s15 }
  0x1e   : > { %p2426_p12 = pneg %p2425_p10  ;;  %p2432_p1 = por %p2431_p0, %p2430_p9 }
  0x20   : > { %p2433_p2 = pnand %p2432_p1, %p2426_p12 }
  0x22   : > { %2436 = shalt.err (!%p2433_p2)
}
  0x23   : > { %s2474_s26 = smov 64   ;;  %s2475_s27 = smov 4  }
  0x24   : > { %2356 = dma.hbm_to_vmem [thread:$0]  (!%p2563_p8), %s2559_s30, 1024, %s2561_s6, %s2568_s8, %s2474_s26, %s2474_s26, %s2475_s27  }
  0x25   : > { %p189_p11 = scmp.lt.s32.totalorder %s2471_s18, 3  ;;  %p3200_p13 = scmp.ge.s32.totalorder %s2471_s18, 1 }
  0x27   : > { %p190_p3 = pnand %p3200_p13, %p189_p11 }
  0x28   : > { %s195_s28 = sand.u32 (!%p190_p3), 1, %s2463_s16  }
  0x29   : > { %193 = sbr.rel (%p190_p3) target bundleno = 1723 (0x6bb), region = 36  ;;  %s1680_s29 = sshll.u32 (!%p190_p3), %s195_s28, 6 }
  0x2a   : > { %s196_s5 = scalar_lea.sflag (!%p190_p3), [#allocation5], %s195_s28  ;;  %s2600_s9 = scalar_lea.vmem (!%p190_p3), [#allocation4], %s1680_s29 }
  0x30   : > { %2454 = dma.done.wait (%p2550_p7), %s196_s5, 1024  }
  0x31   : > { %2456 = vsyncadd (%p2550_p7), %s196_s5, 4294966272  ;;  %p225_p9 = scmp.lt.s32.totalorder %s2533_s19, 1  ;;  %p1681_p8 = scmp.ne.s32.totalorder %s2533_s19, 0 }
  0x32   : > { %v236_v0 = vld [vmem:[%s3193_s0] sm:$0x1] (!%p1681_p8)  ;;  %v238_v1 = vlaneseq (!%p1681_p8) }
  0x33   : > { %s2608_s30 = scalar_select %p225_p9, %s2533_s19, 1 }
  0x34   : > { %235 = sbr.rel (%p1681_p8) target bundleno = 64 (0x40), region = 44  ;;  %237 = vst [vmem:[#allocation2] sm:$0x1] (!%p1681_p8), %v236_v0  ;;  %v239_v2 = vshrl.u32 (!%p1681_p8), %v238_v1, 7 }
  0x35   : > { %s227_s7 = scalar_lea.vmem %s3194_s1, %s2608_s30  ;;  %s230_s11 = scalar_lea.vmem %s3195_s2, %s2608_s30 }
  0x36   : > { %255 = vst [vmem:[#allocation3] sm:$0xff] (!%p1681_p8), %v239_v2  ;;  %v240_v3 = vadd.s32 (!%p1681_p8), 8, %v239_v2  ;;  %v241_v4 = vadd.s32 (!%p1681_p8), 16, %v239_v2  ;;  %v242_v5 = vadd.s32 (!%p1681_p8), 24, %v239_v2  ;;  %v243_v6 = vadd.s32 (!%p1681_p8), 32, %v239_v2 }
  0x37   : > { %v244_v7 = vadd.s32 (!%p1681_p8), 40, %v239_v2  ;;  %v245_v8 = vadd.s32 (!%p1681_p8), 48, %v239_v2  ;;  %v246_v9 = vadd.s32 (!%p1681_p8), 56, %v239_v2  ;;  %v247_v10 = vadd.s32 (!%p1681_p8), 64, %v239_v2 }
  0x38   : > { %256 = vst [vmem:[#allocation3 + $0x8] sm:$0xff] (!%p1681_p8), %v240_v3  ;;  %257 = vst [vmem:[#allocation3 + $0x10] sm:$0xff] (!%p1681_p8), %v241_v4  ;;  %v248_v11 = vadd.s32 (!%p1681_p8), 72, %v239_v2  ;;  %v249_v12 = vadd.s32 (!%p1681_p8), 80, %v239_v2  ;;  %v250_v13 = vadd.s32 (!%p1681_p8), 88, %v239_v2  ;;  %v251_v14 = vadd.s32 (!%p1681_p8), 96, %v239_v2 }
  0x39   : > { %258 = vst [vmem:[#allocation3 + $0x18] sm:$0xff] (!%p1681_p8), %v242_v5  ;;  %259 = vst [vmem:[#allocation3 + $0x20] sm:$0xff] (!%p1681_p8), %v243_v6  ;;  %v252_v15 = vadd.s32 (!%p1681_p8), 104, %v239_v2  ;;  %v253_v16 = vadd.s32 (!%p1681_p8), 112, %v239_v2  ;;  %v254_v17 = vadd.s32 (!%p1681_p8), 120, %v239_v2 }
  0x3a   : > { %260 = vst [vmem:[#allocation3 + $0x28] sm:$0xff] (!%p1681_p8), %v244_v7  ;;  %261 = vst [vmem:[#allocation3 + $0x30] sm:$0xff] (!%p1681_p8), %v245_v8 }
  0x3b   : > { %262 = vst [vmem:[#allocation3 + $0x38] sm:$0xff] %v246_v9  ;;  %263 = vst [vmem:[#allocation3 + $0x40] sm:$0xff] %v247_v10 }
  0x3c   : > { %264 = vst [vmem:[#allocation3 + $0x48] sm:$0xff] %v248_v11  ;;  %265 = vst [vmem:[#allocation3 + $0x50] sm:$0xff] %v249_v12 }
  0x3d   : > { %266 = vst [vmem:[#allocation3 + $0x58] sm:$0xff] %v250_v13  ;;  %267 = vst [vmem:[#allocation3 + $0x60] sm:$0xff] %v251_v14 }
  0x3e   : > { %268 = vst [vmem:[#allocation3 + $0x68] sm:$0xff] %v252_v15  ;;  %269 = vst [vmem:[#allocation3 + $0x70] sm:$0xff] %v253_v16 }
  0x3f   : > { %270 = vst [vmem:[#allocation3 + $0x78] sm:$0xff] %v254_v17 }
  0x40 PF: > { %v2627_v18 = vld [vmem:[%s227_s7] ss:$0 sm:$0xff]  ;;  %v2476_v21 = vmov 0.0   ;;  %vm2477_vm2 = vmmov 0   ;;  %v2478_v27 = vmov 1.0|1.0   ;;  %v498_v53 = vlaneseq }
  0x41   : > { %1920 = vmatprep.subr.bf16.mxu0 %v2476_v21  ;;  %1936 = vmatprep.mubr.msk.bf16.mxu0 %vm2477_vm2, %v2476_v21  ;;  %v271_v37 = vld [vmem:[#allocation2] sm:$0x1]  ;;  %s2479_s22 = smov 64   ;;  %s2480_s25 = smov 32  }
  0x42   : > { %v2629_v19 = vld [vmem:[#allocation3] sm:$0xff]  ;;  %2047 = vmatprep.mubr.msk.f32.mxu1 %vm2477_vm2, %v2476_v21  ;;  %v350_v41 = vpack.c.bf16 %v271_v37, %v271_v37  ;;  %v499_v54 = vshrl.u32 %v498_v53, 7  ;;  %v1747_v56 = vld [vmem:[%s230_s11] ss:$0 sm:$0xff]  ;;  %s2481_s26 = smov 16   ;;  %s2482_s27 = smov 8  }
  0x43   : > { %vm294_vm0 = vcmp.eq.s32.totalorder %v2629_v19, %v2627_v18  ;;  %v2688_v33 = vld [vmem:[#allocation3 + $0x48] sm:$0xff]  ;;  %v2702_v35 = vld [vmem:[#allocation3 + $0x50] sm:$0xff]  ;;  %s2483_s28 = smov 4   ;;  %s2484_s29 = smov 2  }
  0x44   : > { %v2631_v20 = vld [vmem:[#allocation3 + $0x8] sm:$0xff]  ;;  %v2638_v22 = vld [vmem:[#allocation3 + $0x10] sm:$0xff]  ;;  %vm303_vm14 = vcmp.eq.s32.totalorder %v2688_v33, %v2627_v18  ;;  %v2704_v36 = vld [vmem:[#allocation3 + $0x58] sm:$0xff]  ;;  %v351_v45 = vunpack.c.l.bf16 %v350_v41  ;;  %v500_v55 = vsub.s32 0, %v499_v54  ;;  %s2486_s5 = smov 1   ;;  %p1748_p7 = scmp.ne.s32.totalorder %s2533_s19, 1 }
  0x45   : > { %vm295_vm1 = vcmp.eq.s32.totalorder %v2631_v20, %v2627_v18  ;;  %v2640_v23 = vld [vmem:[#allocation3 + $0x18] sm:$0xff]  ;;  %vm296_vm4 = vcmp.eq.s32.totalorder %v2638_v22, %v2627_v18  ;;  %v2652_v25 = vld [vmem:[#allocation3 + $0x20] sm:$0xff]  ;;  %v2720_v40 = vld [vmem:[#allocation3 + $0x68] sm:$0xff] }
  0x46   : > { %vm2644_vm3 = vmpackc.low %vm295_vm1, %vm294_vm0  ;;  %vm297_vm5 = vcmp.eq.s32.totalorder %v2640_v23, %v2627_v18  ;;  %v2654_v26 = vld [vmem:[#allocation3 + $0x28] sm:$0xff]  ;;  %vm298_vm7 = vcmp.eq.s32.totalorder %v2652_v25, %v2627_v18  ;;  %v2670_v29 = vld [vmem:[#allocation3 + $0x30] sm:$0xff]  ;;  %vm304_vm0 = vcmp.eq.s32.totalorder %v2702_v35, %v2627_v18  ;;  %vm305_vm1 = vcmp.eq.s32.totalorder %v2704_v36, %v2627_v18 }
  0x47   : > { %1921 = vmatpush3.bf16.msk.msra.mxu0 %vm2644_vm3, %v2478_v27  ;;  %vm2662_vm6 = vmpackc.low %vm297_vm5, %vm296_vm4  ;;  %vm299_vm8 = vcmp.eq.s32.totalorder %v2654_v26, %v2627_v18  ;;  %v2672_v30 = vld [vmem:[#allocation3 + $0x38] sm:$0xff]  ;;  %vm300_vm10 = vcmp.eq.s32.totalorder %v2670_v29, %v2627_v18  ;;  %v2686_v32 = vld [vmem:[#allocation3 + $0x40] sm:$0xff]  ;;  %v352_v47 = vsub.f32 %v271_v37, %v351_v45 }
  0x48   : > { %1922 = vmatprep.subr.bf16.mxu0 %v2476_v21  ;;  %vm2678_vm9 = vmpackc.low %vm299_vm8, %vm298_vm7  ;;  %vm301_vm11 = vcmp.eq.s32.totalorder %v2672_v30, %v2627_v18  ;;  %vm302_vm13 = vcmp.eq.s32.totalorder %v2686_v32, %v2627_v18  ;;  %v2718_v39 = vld [vmem:[#allocation3 + $0x60] sm:$0xff]  ;;  %vm307_vm7 = vcmp.eq.s32.totalorder %v2720_v40, %v2627_v18  ;;  %v2734_v43 = vld [vmem:[#allocation3 + $0x70] sm:$0xff] }
  0x49   : > { %vm2694_vm12 = vmpackc.low %vm301_vm11, %vm300_vm10  ;;  %vm306_vm5 = vcmp.eq.s32.totalorder %v2718_v39, %v2627_v18  ;;  %v2736_v44 = vld [vmem:[#allocation3 + $0x78] sm:$0xff]  ;;  %vm308_vm10 = vcmp.eq.s32.totalorder %v2734_v43, %v2627_v18  ;;  %v353_v49 = vpack.c.bf16 %v352_v47, %v352_v47 }
  0x4a   : > { %vm2710_vm15 = vmpackc.low %vm303_vm14, %vm302_vm13  ;;  %vm309_vm11 = vcmp.eq.s32.totalorder %v2736_v44, %v2627_v18  ;;  %vm487_vm14 = vcmp.eq.s32.totalorder %v2654_v26, %v1747_v56 }
  0x4b   : > { %1923 = vmatpush3.bf16.msk.msra.mxu0 %vm2662_vm6, %v2478_v27  ;;  %vm2726_vm4 = vmpackc.low %vm305_vm1, %vm304_vm0  ;;  %v354_v50 = vunpack.c.l.bf16 %v353_v49  ;;  %vm489_vm0 = vcmp.eq.s32.totalorder %v2672_v30, %v1747_v56  ;;  %vm488_vm1 = vcmp.eq.s32.totalorder %v2670_v29, %v1747_v56 }
  0x4c   : > { %1924 = vmatprep.subr.bf16.mxu0 %v2476_v21  ;;  %vm2742_vm8 = vmpackc.low %vm307_vm7, %vm306_vm5  ;;  %vm490_vm5 = vcmp.eq.s32.totalorder %v2686_v32, %v1747_v56  ;;  %vm493_vm7 = vcmp.eq.s32.totalorder %v2704_v36, %v1747_v56 }
  0x4d   : > { %vm2754_vm13 = vmpackc.low %vm309_vm11, %vm308_vm10  ;;  %v355_v51 = vsub.f32 %v352_v47, %v354_v50  ;;  %vm495_vm10 = vcmp.eq.s32.totalorder %v2720_v40, %v1747_v56  ;;  %vm494_vm11 = vcmp.eq.s32.totalorder %v2718_v39, %v1747_v56 }
  0x4f   : > { %1925 = vmatpush3.bf16.msk.msra.mxu0 %vm2678_vm9, %v2478_v27  ;;  %v356_v52 = vpack.c.bf16 %v355_v51, %v355_v51 }
  0x50   : > { %1926 = vmatprep.subr.bf16.mxu0 %v2476_v21 }
  0x53   : > { %1927 = vmatpush3.bf16.msk.msra.mxu0 %vm2694_vm12, %v2478_v27 }
  0x54   : > { %1928 = vmatprep.subr.bf16.mxu0 %v2476_v21 }
  0x57   : > { %1929 = vmatpush3.bf16.msk.msra.mxu0 %vm2710_vm15, %v2478_v27 }
  0x58   : > { %1930 = vmatprep.subr.bf16.mxu0 %v2476_v21 }
  0x5b   : > { %1931 = vmatpush3.bf16.msk.msra.mxu0 %vm2726_vm4, %v2478_v27 }
  0x5c   : > { %1932 = vmatprep.subr.bf16.mxu0 %v2476_v21 }
  0x5f   : > { %1933 = vmatpush3.bf16.msk.msra.mxu0 %vm2742_vm8, %v2478_v27 }
  0x60   : > { %1934 = vmatprep.subr.bf16.mxu0 %v2476_v21 }
  0x63   : > { %1935 = vmatpush3.bf16.msk.msra.mxu0 %vm2754_vm13, %v2478_v27 }
  0x64   : > { %1940 = vmatprep.subr.bf16.mxu0 %v2476_v21 }
  0x66   : > { %1937 = vmatmul.mubr.bf16.vlgmr.msra.gmra.mrb[0].mxu0 %v353_v49 }
  0x67   : > { %1941 = vmatpush3.bf16.msk.msra.mxu0 %vm2644_vm3, %v2478_v27  ;;  %1956 = vmatprep.mubr.msk.bf16.mxu0 %vm2477_vm2, %v2476_v21 }
  0x68   : > { %1942 = vmatprep.subr.bf16.mxu0 %v2476_v21 }
  0x6b   : > { %1943 = vmatpush3.bf16.msk.msra.mxu0 %vm2662_vm6, %v2478_v27 }
  0x6c   : > { %1944 = vmatprep.subr.bf16.mxu0 %v2476_v21 }
  0x6f   : > { %1945 = vmatpush3.bf16.msk.msra.mxu0 %vm2678_vm9, %v2478_v27 }
  0x70   : > { %1946 = vmatprep.subr.bf16.mxu0 %v2476_v21 }
  0x73   : > { %1947 = vmatpush3.bf16.msk.msra.mxu0 %vm2694_vm12, %v2478_v27 }
  0x74   : > { %1948 = vmatprep.subr.bf16.mxu0 %v2476_v21 }
  0x77   : > { %1949 = vmatpush3.bf16.msk.msra.mxu0 %vm2710_vm15, %v2478_v27 }
  0x78   : > { %1950 = vmatprep.subr.bf16.mxu0 %v2476_v21 }
  0x7b   : > { %1951 = vmatpush3.bf16.msk.msra.mxu0 %vm2726_vm4, %v2478_v27 }
  0x7c   : > { %1952 = vmatprep.subr.bf16.mxu0 %v2476_v21 }
  0x7f   : > { %1953 = vmatpush3.bf16.msk.msra.mxu0 %vm2742_vm8, %v2478_v27 }
  0x80   : > { %1954 = vmatprep.subr.bf16.mxu0 %v2476_v21 }
  0x83   : > { %1955 = vmatpush3.bf16.msk.msra.mxu0 %vm2754_vm13, %v2478_v27 }
  0x84   : > { %1960 = vmatprep.subr.bf16.mxu0 %v2476_v21 }
  0x86   : > { %1957 = vmatmul.mubr.bf16.vlgmr.msra.gmra.mrb[0].mxu0 %v350_v41 }
  0x87   : > { %1961 = vmatpush3.bf16.msk.msra.mxu0 %vm2644_vm3, %v2478_v27  ;;  %1976 = vmatprep.mubr.msk.bf16.mxu0 %vm2477_vm2, %v2476_v21  ;;  %vm484_vm3 = vcmp.eq.s32.totalorder %v2638_v22, %v1747_v56 }
  0x88   : > { %1962 = vmatprep.subr.bf16.mxu0 %v2476_v21 }
  0x8b   : > { %1963 = vmatpush3.bf16.msk.msra.mxu0 %vm2662_vm6, %v2478_v27  ;;  %vm482_vm6 = vcmp.eq.s32.totalorder %v2629_v19, %v1747_v56 }
  0x8c   : > { %1964 = vmatprep.subr.bf16.mxu0 %v2476_v21 }
  0x8f   : > { %1965 = vmatpush3.bf16.msk.msra.mxu0 %vm2678_vm9, %v2478_v27  ;;  %vm485_vm9 = vcmp.eq.s32.totalorder %v2640_v23, %v1747_v56 }
  0x90   : > { %1966 = vmatprep.subr.bf16.mxu0 %v2476_v21 }
  0x93   : > { %1967 = vmatpush3.bf16.msk.msra.mxu0 %vm2694_vm12, %v2478_v27  ;;  %vm483_vm12 = vcmp.eq.s32.totalorder %v2631_v20, %v1747_v56 }
  0x94   : > { %1968 = vmatprep.subr.bf16.mxu0 %v2476_v21 }
  0x97   : > { %1969 = vmatpush3.bf16.msk.msra.mxu0 %vm2710_vm15, %v2478_v27  ;;  %vm486_vm15 = vcmp.eq.s32.totalorder %v2652_v25, %v1747_v56 }
  0x98   : > { %1970 = vmatprep.subr.bf16.mxu0 %v2476_v21 }
  0x9b   : > { %1971 = vmatpush3.bf16.msk.msra.mxu0 %vm2726_vm4, %v2478_v27  ;;  %vm491_vm4 = vcmp.eq.s32.totalorder %v2688_v33, %v1747_v56 }
  0x9c   : > { %1972 = vmatprep.subr.bf16.mxu0 %v2476_v21 }
  0x9f   : > { %1973 = vmatpush3.bf16.msk.msra.mxu0 %vm2742_vm8, %v2478_v27  ;;  %vm492_vm8 = vcmp.eq.s32.totalorder %v2702_v35, %v1747_v56 }
  0xa0   : > { %1974 = vmatprep.subr.bf16.mxu0 %v2476_v21 }
  0xa3   : > { %1975 = vmatpush3.bf16.msk.msra.mxu0 %vm2754_vm13, %v2478_v27  ;;  %vm497_vm13 = vcmp.eq.s32.totalorder %v2736_v44, %v1747_v56 }
  0xa6   : > { %1977 = vmatmul.mubr.bf16.vlgmr.msra.gmra.mrb[0].mxu0 %v356_v52 }
  0xa7   : > { %2012 = vmatprep.mubr.msk.f32.mxu0 %vm2477_vm2, %v2476_v21 }
 0x179   : > { %v471_v57 = vpop.f32.mrb[0].mxu0 }
 0x17a   : > { %v501_v58 = vrot.slane %v471_v57, %v500_v55  ;;  %v1978_v59 = vpop.f32.mrb[1].mxu0 }
 0x17b   : > { %v474_v60 = vpop.f32.mrb[2].mxu0 }
 0x17c   : > { %v1979_v61 = vpop.f32.mrb[3].mxu0  ;;  %v504_v62 = vsel %vm484_vm3, %v501_v58, 1.0  ;;  %v502_v63 = vsel %vm482_vm6, %v501_v58, 1.0  ;;  %v505_v0 = vsel %vm485_vm9, %v501_v58, 1.0  ;;  %v503_v1 = vsel %vm483_vm12, %v501_v58, 1.0 }
 0x17d   : > { %522 = vrot.lane.b32.xlu1 %v504_v62, %s2479_s22  ;;  %518 = vrot.lane.b32.xlu0 %v502_v63, %s2479_s22  ;;  %v507_v2 = vsel %vm487_vm14, %v501_v58, 1.0  ;;  %v506_v3 = vsel %vm486_vm15, %v501_v58, 1.0  ;;  %v509_v4 = vsel %vm489_vm0, %v501_v58, 1.0  ;;  %v508_v5 = vsel %vm488_vm1, %v501_v58, 1.0 }
 0x17e   : > { %v511_v6 = vsel %vm491_vm4, %v501_v58, 1.0  ;;  %v510_v7 = vsel %vm490_vm5, %v501_v58, 1.0  ;;  %v513_v8 = vsel %vm493_vm7, %v501_v58, 1.0  ;;  %v512_v9 = vsel %vm492_vm8, %v501_v58, 1.0 }
 0x17f   : > { %v515_v10 = vsel %vm495_vm10, %v501_v58, 1.0  ;;  %v514_v11 = vsel %vm494_vm11, %v501_v58, 1.0  ;;  %vm496_vm3 = vcmp.eq.s32.totalorder %v2734_v43, %v1747_v56  ;;  %v517_v12 = vsel %vm497_vm13, %v501_v58, 1.0 }
 0x180   : > { %v516_v13 = vsel %vm496_vm3, %v501_v58, 1.0 }
 0x181   : > { %524 = vrot.lane.b32.xlu1 %v505_v0, %s2479_s22  ;;  %520 = vrot.lane.b32.xlu0 %v503_v1, %s2479_s22 }
 0x185   : > { %528 = vrot.lane.b32.xlu1 %v507_v2, %s2479_s22  ;;  %526 = vrot.lane.b32.xlu0 %v506_v3, %s2479_s22 }
 0x189   : > { %532 = vrot.lane.b32.xlu1 %v509_v4, %s2479_s22  ;;  %530 = vrot.lane.b32.xlu0 %v508_v5, %s2479_s22 }
 0x18d   : > { %536 = vrot.lane.b32.xlu1 %v511_v6, %s2479_s22  ;;  %534 = vrot.lane.b32.xlu0 %v510_v7, %s2479_s22 }
 0x191   : > { %540 = vrot.lane.b32.xlu1 %v513_v8, %s2479_s22  ;;  %538 = vrot.lane.b32.xlu0 %v512_v9, %s2479_s22 }
 0x195   : > { %544 = vrot.lane.b32.xlu1 %v515_v10, %s2479_s22  ;;  %542 = vrot.lane.b32.xlu0 %v514_v11, %s2479_s22 }
 0x199   : > { %548 = vrot.lane.b32.xlu1 %v517_v12, %s2479_s22  ;;  %546 = vrot.lane.b32.xlu0 %v516_v13, %s2479_s22 }
 0x1ef   : > { %v523_v14 = vpop.permute.xlu1 %522  ;;  %v519_v15 = vpop.permute.xlu0 %518 }
 0x1f0   : > { %v550_v16 = vmul.f32 %v519_v15, %v502_v63  ;;  %v552_v19 = vmul.f32 %v523_v14, %v504_v62 }
 0x1f2   : > { %566 = vrot.lane.b32.xlu0 %v550_v16, %s2480_s25 }
 0x1f3   : > { %v525_v17 = vpop.permute.xlu1 %524  ;;  %v521_v18 = vpop.permute.xlu0 %520 }
 0x1f4   : > { %v551_v20 = vmul.f32 %v521_v18, %v503_v1  ;;  %v553_v24 = vmul.f32 %v525_v17, %v505_v0 }
 0x1f6   : > { %570 = vrot.lane.b32.xlu0 %v552_v19, %s2480_s25  ;;  %568 = vrot.lane.b32.xlu1 %v551_v20, %s2480_s25 }
 0x1f7   : > { %v529_v22 = vpop.permute.xlu1 %528  ;;  %v527_v23 = vpop.permute.xlu0 %526 }
 0x1f8   : > { %v554_v25 = vmul.f32 %v527_v23, %v506_v3  ;;  %v555_v28 = vmul.f32 %v529_v22, %v507_v2 }
 0x1fa   : > { %572 = vrot.lane.b32.xlu1 %v553_v24, %s2480_s25  ;;  %574 = vrot.lane.b32.xlu0 %v554_v25, %s2480_s25 }
 0x1fb   : > { %v533_v26 = vpop.permute.xlu1 %532  ;;  %v531_v27 = vpop.permute.xlu0 %530 }
 0x1fc   : > { %v556_v29 = vmul.f32 %v531_v27, %v508_v5  ;;  %v557_v32 = vmul.f32 %v533_v26, %v509_v4 }
 0x1fe   : > { %576 = vrot.lane.b32.xlu1 %v555_v28, %s2480_s25  ;;  %578 = vrot.lane.b32.xlu0 %v556_v29, %s2480_s25 }
 0x1ff   : > { %v537_v30 = vpop.permute.xlu1 %536  ;;  %v535_v31 = vpop.permute.xlu0 %534 }
 0x200   : > { %v558_v33 = vmul.f32 %v535_v31, %v510_v7  ;;  %v559_v36 = vmul.f32 %v537_v30, %v511_v6 }
 0x202   : > { %580 = vrot.lane.b32.xlu1 %v557_v32, %s2480_s25  ;;  %582 = vrot.lane.b32.xlu0 %v558_v33, %s2480_s25 }
 0x203   : > { %v541_v34 = vpop.permute.xlu1 %540  ;;  %v539_v35 = vpop.permute.xlu0 %538 }
 0x204   : > { %v560_v37 = vmul.f32 %v539_v35, %v512_v9  ;;  %v561_v40 = vmul.f32 %v541_v34, %v513_v8 }
 0x206   : > { %584 = vrot.lane.b32.xlu1 %v559_v36, %s2480_s25  ;;  %586 = vrot.lane.b32.xlu0 %v560_v37, %s2480_s25 }
 0x207   : > { %v545_v38 = vpop.permute.xlu1 %544  ;;  %v543_v39 = vpop.permute.xlu0 %542 }
 0x208   : > { %v562_v41 = vmul.f32 %v543_v39, %v514_v11  ;;  %v563_v43 = vmul.f32 %v545_v38, %v515_v10 }
 0x20a   : > { %588 = vrot.lane.b32.xlu1 %v561_v40, %s2480_s25  ;;  %590 = vrot.lane.b32.xlu0 %v562_v41, %s2480_s25 }
 0x20b   : > { %v547_v42 = vpop.permute.xlu0 %546  ;;  %v549_v45 = vpop.permute.xlu1 %548 }
 0x20c   : > { %v564_v44 = vmul.f32 %v547_v42, %v516_v13  ;;  %v565_v46 = vmul.f32 %v549_v45, %v517_v12 }
 0x20e   : > { %592 = vrot.lane.b32.xlu1 %v563_v43, %s2480_s25  ;;  %594 = vrot.lane.b32.xlu0 %v564_v44, %s2480_s25 }
 0x212   : > { %596 = vrot.lane.b32.xlu1 %v565_v46, %s2480_s25 }
 0x264   : > { %v567_v47 = vpop.permute.xlu0 %566 }
 0x265   : > { %v598_v48 = vmul.f32 %v567_v47, %v550_v16 }
 0x267   : > { %614 = vrot.lane.b32.xlu0 %v598_v48, %s2481_s26 }
 0x268   : > { %v569_v49 = vpop.permute.xlu1 %568  ;;  %v571_v50 = vpop.permute.xlu0 %570 }
 0x269   : > { %v599_v51 = vmul.f32 %v569_v49, %v551_v20  ;;  %v600_v52 = vmul.f32 %v571_v50, %v552_v19 }
 0x26b   : > { %616 = vrot.lane.b32.xlu1 %v599_v51, %s2481_s26  ;;  %618 = vrot.lane.b32.xlu0 %v600_v52, %s2481_s26 }
 0x26c   : > { %v573_v53 = vpop.permute.xlu1 %572  ;;  %v575_v54 = vpop.permute.xlu0 %574 }
 0x26d   : > { %v601_v55 = vmul.f32 %v573_v53, %v553_v24  ;;  %v602_v56 = vmul.f32 %v575_v54, %v554_v25 }
 0x26f   : > { %620 = vrot.lane.b32.xlu1 %v601_v55, %s2481_s26  ;;  %622 = vrot.lane.b32.xlu0 %v602_v56, %s2481_s26 }
 0x270   : > { %v577_v57 = vpop.permute.xlu1 %576  ;;  %v579_v58 = vpop.permute.xlu0 %578 }
 0x271   : > { %v603_v59 = vmul.f32 %v577_v57, %v555_v28  ;;  %v604_v60 = vmul.f32 %v579_v58, %v556_v29 }
 0x273   : > { %624 = vrot.lane.b32.xlu1 %v603_v59, %s2481_s26  ;;  %626 = vrot.lane.b32.xlu0 %v604_v60, %s2481_s26 }
 0x274   : > { %v581_v61 = vpop.permute.xlu1 %580  ;;  %v583_v62 = vpop.permute.xlu0 %582 }
 0x275   : > { %v605_v63 = vmul.f32 %v581_v61, %v557_v32  ;;  %v606_v0 = vmul.f32 %v583_v62, %v558_v33 }
 0x277   : > { %628 = vrot.lane.b32.xlu1 %v605_v63, %s2481_s26  ;;  %630 = vrot.lane.b32.xlu0 %v606_v0, %s2481_s26 }
 0x278   : > { %v585_v1 = vpop.permute.xlu1 %584  ;;  %v587_v2 = vpop.permute.xlu0 %586 }
 0x279   : > { %v607_v3 = vmul.f32 %v585_v1, %v559_v36  ;;  %v608_v4 = vmul.f32 %v587_v2, %v560_v37 }
 0x27b   : > { %632 = vrot.lane.b32.xlu1 %v607_v3, %s2481_s26  ;;  %634 = vrot.lane.b32.xlu0 %v608_v4, %s2481_s26 }
 0x27c   : > { %v589_v5 = vpop.permute.xlu1 %588  ;;  %v591_v6 = vpop.permute.xlu0 %590 }
 0x27d   : > { %v609_v7 = vmul.f32 %v589_v5, %v561_v40  ;;  %v610_v8 = vmul.f32 %v591_v6, %v562_v41 }
 0x27f   : > { %636 = vrot.lane.b32.xlu1 %v609_v7, %s2481_s26  ;;  %638 = vrot.lane.b32.xlu0 %v610_v8, %s2481_s26 }
 0x280   : > { %v593_v9 = vpop.permute.xlu1 %592  ;;  %v595_v10 = vpop.permute.xlu0 %594 }
 0x281   : > { %v611_v11 = vmul.f32 %v593_v9, %v563_v43  ;;  %v612_v12 = vmul.f32 %v595_v10, %v564_v44 }
 0x283   : > { %640 = vrot.lane.b32.xlu1 %v611_v11, %s2481_s26  ;;  %642 = vrot.lane.b32.xlu0 %v612_v12, %s2481_s26 }
 0x284   : > { %v597_v13 = vpop.permute.xlu1 %596 }
 0x285   : > { %v613_v14 = vmul.f32 %v597_v13, %v565_v46 }
 0x287   : > { %644 = vrot.lane.b32.xlu1 %v613_v14, %s2481_s26 }
 0x2d9   : > { %v615_v15 = vpop.permute.xlu0 %614 }
 0x2da   : > { %v646_v16 = vmul.f32 %v615_v15, %v598_v48 }
 0x2dc   : > { %662 = vrot.lane.b32.xlu0 %v646_v16, %s2482_s27 }
 0x2dd   : > { %v617_v17 = vpop.permute.xlu1 %616  ;;  %v619_v18 = vpop.permute.xlu0 %618 }
 0x2de   : > { %v647_v19 = vmul.f32 %v617_v17, %v599_v51  ;;  %v648_v20 = vmul.f32 %v619_v18, %v600_v52 }
 0x2e0   : > { %664 = vrot.lane.b32.xlu1 %v647_v19, %s2482_s27  ;;  %666 = vrot.lane.b32.xlu0 %v648_v20, %s2482_s27 }
 0x2e1   : > { %v621_v22 = vpop.permute.xlu1 %620  ;;  %v623_v23 = vpop.permute.xlu0 %622 }
 0x2e2   : > { %v649_v24 = vmul.f32 %v621_v22, %v601_v55  ;;  %v650_v25 = vmul.f32 %v623_v23, %v602_v56 }
 0x2e4   : > { %668 = vrot.lane.b32.xlu1 %v649_v24, %s2482_s27  ;;  %670 = vrot.lane.b32.xlu0 %v650_v25, %s2482_s27 }
 0x2e5   : > { %v625_v26 = vpop.permute.xlu1 %624  ;;  %v627_v27 = vpop.permute.xlu0 %626 }
 0x2e6   : > { %v651_v28 = vmul.f32 %v625_v26, %v603_v59  ;;  %v652_v29 = vmul.f32 %v627_v27, %v604_v60 }
 0x2e8   : > { %672 = vrot.lane.b32.xlu1 %v651_v28, %s2482_s27  ;;  %674 = vrot.lane.b32.xlu0 %v652_v29, %s2482_s27 }
 0x2e9   : > { %v629_v30 = vpop.permute.xlu1 %628  ;;  %v631_v31 = vpop.permute.xlu0 %630 }
 0x2ea   : > { %v653_v32 = vmul.f32 %v629_v30, %v605_v63  ;;  %v654_v33 = vmul.f32 %v631_v31, %v606_v0 }
 0x2ec   : > { %676 = vrot.lane.b32.xlu1 %v653_v32, %s2482_s27  ;;  %678 = vrot.lane.b32.xlu0 %v654_v33, %s2482_s27 }
 0x2ed   : > { %v633_v34 = vpop.permute.xlu1 %632  ;;  %v635_v35 = vpop.permute.xlu0 %634 }
 0x2ee   : > { %v655_v36 = vmul.f32 %v633_v34, %v607_v3  ;;  %v656_v37 = vmul.f32 %v635_v35, %v608_v4 }
 0x2f0   : > { %680 = vrot.lane.b32.xlu1 %v655_v36, %s2482_s27  ;;  %682 = vrot.lane.b32.xlu0 %v656_v37, %s2482_s27 }
 0x2f1   : > { %v637_v38 = vpop.permute.xlu1 %636  ;;  %v639_v39 = vpop.permute.xlu0 %638 }
 0x2f2   : > { %v657_v40 = vmul.f32 %v637_v38, %v609_v7  ;;  %v658_v41 = vmul.f32 %v639_v39, %v610_v8 }
 0x2f4   : > { %684 = vrot.lane.b32.xlu1 %v657_v40, %s2482_s27  ;;  %686 = vrot.lane.b32.xlu0 %v658_v41, %s2482_s27 }
 0x2f5   : > { %v641_v42 = vpop.permute.xlu1 %640  ;;  %v643_v43 = vpop.permute.xlu0 %642 }
 0x2f6   : > { %v659_v44 = vmul.f32 %v641_v42, %v611_v11  ;;  %v660_v45 = vmul.f32 %v643_v43, %v612_v12 }
 0x2f8   : > { %688 = vrot.lane.b32.xlu1 %v659_v44, %s2482_s27  ;;  %690 = vrot.lane.b32.xlu0 %v660_v45, %s2482_s27 }
 0x2f9   : > { %v645_v46 = vpop.permute.xlu1 %644 }
 0x2fa   : > { %v661_v47 = vmul.f32 %v645_v46, %v613_v14 }
 0x2fc   : > { %692 = vrot.lane.b32.xlu1 %v661_v47, %s2482_s27 }
 0x34e   : > { %v663_v48 = vpop.permute.xlu0 %662 }
 0x34f   : > { %v694_v49 = vmul.f32 %v663_v48, %v646_v16 }
 0x351   : > { %710 = vrot.lane.b32.xlu0 %v694_v49, %s2483_s28 }
 0x352   : > { %v665_v50 = vpop.permute.xlu1 %664  ;;  %v667_v51 = vpop.permute.xlu0 %666 }
 0x353   : > { %v695_v52 = vmul.f32 %v665_v50, %v647_v19  ;;  %v696_v53 = vmul.f32 %v667_v51, %v648_v20 }
 0x355   : > { %712 = vrot.lane.b32.xlu1 %v695_v52, %s2483_s28  ;;  %714 = vrot.lane.b32.xlu0 %v696_v53, %s2483_s28 }
 0x356   : > { %v669_v54 = vpop.permute.xlu1 %668  ;;  %v671_v55 = vpop.permute.xlu0 %670 }
 0x357   : > { %v697_v56 = vmul.f32 %v669_v54, %v649_v24  ;;  %v698_v57 = vmul.f32 %v671_v55, %v650_v25 }
 0x359   : > { %716 = vrot.lane.b32.xlu1 %v697_v56, %s2483_s28  ;;  %718 = vrot.lane.b32.xlu0 %v698_v57, %s2483_s28 }
 0x35a   : > { %v673_v58 = vpop.permute.xlu1 %672  ;;  %v675_v59 = vpop.permute.xlu0 %674 }
 0x35b   : > { %v699_v60 = vmul.f32 %v673_v58, %v651_v28  ;;  %v700_v61 = vmul.f32 %v675_v59, %v652_v29 }
 0x35d   : > { %720 = vrot.lane.b32.xlu1 %v699_v60, %s2483_s28  ;;  %722 = vrot.lane.b32.xlu0 %v700_v61, %s2483_s28 }
 0x35e   : > { %v677_v62 = vpop.permute.xlu1 %676  ;;  %v679_v63 = vpop.permute.xlu0 %678 }
 0x35f   : > { %v701_v0 = vmul.f32 %v677_v62, %v653_v32  ;;  %v702_v1 = vmul.f32 %v679_v63, %v654_v33 }
 0x361   : > { %724 = vrot.lane.b32.xlu1 %v701_v0, %s2483_s28  ;;  %726 = vrot.lane.b32.xlu0 %v702_v1, %s2483_s28 }
 0x362   : > { %v681_v2 = vpop.permute.xlu1 %680  ;;  %v683_v3 = vpop.permute.xlu0 %682 }
 0x363   : > { %v703_v4 = vmul.f32 %v681_v2, %v655_v36  ;;  %v704_v5 = vmul.f32 %v683_v3, %v656_v37 }
 0x365   : > { %728 = vrot.lane.b32.xlu1 %v703_v4, %s2483_s28  ;;  %730 = vrot.lane.b32.xlu0 %v704_v5, %s2483_s28 }
 0x366   : > { %v685_v6 = vpop.permute.xlu1 %684  ;;  %v687_v7 = vpop.permute.xlu0 %686 }
 0x367   : > { %v705_v8 = vmul.f32 %v685_v6, %v657_v40  ;;  %v706_v9 = vmul.f32 %v687_v7, %v658_v41 }
 0x369   : > { %732 = vrot.lane.b32.xlu1 %v705_v8, %s2483_s28  ;;  %734 = vrot.lane.b32.xlu0 %v706_v9, %s2483_s28 }
 0x36a   : > { %v689_v10 = vpop.permute.xlu1 %688  ;;  %v691_v11 = vpop.permute.xlu0 %690 }
 0x36b   : > { %v707_v12 = vmul.f32 %v689_v10, %v659_v44  ;;  %v708_v13 = vmul.f32 %v691_v11, %v660_v45 }
 0x36d   : > { %736 = vrot.lane.b32.xlu1 %v707_v12, %s2483_s28  ;;  %738 = vrot.lane.b32.xlu0 %v708_v13, %s2483_s28 }
 0x36e   : > { %v693_v14 = vpop.permute.xlu1 %692 }
 0x36f   : > { %v709_v15 = vmul.f32 %v693_v14, %v661_v47 }
 0x371   : > { %740 = vrot.lane.b32.xlu1 %v709_v15, %s2483_s28 }
 0x3c3   : > { %v711_v16 = vpop.permute.xlu0 %710 }
 0x3c4   : > { %v742_v17 = vmul.f32 %v711_v16, %v694_v49  ;;  %v2485_v49 = vmov 0  }
 0x3c5   : > { %2405 = vset.pattern.permute.xlu0 %v2485_v49  ;;  %2406 = vset.pattern.permute.xlu1 %v2485_v49 }
 0x3c6   : > { %758 = vrot.lane.b32.xlu0 %v742_v17, %s2484_s29 }
 0x3c7   : > { %v713_v18 = vpop.permute.xlu1 %712  ;;  %v715_v19 = vpop.permute.xlu0 %714 }
 0x3c8   : > { %v743_v20 = vmul.f32 %v713_v18, %v695_v52  ;;  %v744_v22 = vmul.f32 %v715_v19, %v696_v53 }
 0x3ca   : > { %760 = vrot.lane.b32.xlu1 %v743_v20, %s2484_s29  ;;  %762 = vrot.lane.b32.xlu0 %v744_v22, %s2484_s29 }
 0x3cb   : > { %v717_v23 = vpop.permute.xlu1 %716  ;;  %v719_v24 = vpop.permute.xlu0 %718 }
 0x3cc   : > { %v745_v25 = vmul.f32 %v717_v23, %v697_v56  ;;  %v746_v26 = vmul.f32 %v719_v24, %v698_v57 }
 0x3ce   : > { %764 = vrot.lane.b32.xlu1 %v745_v25, %s2484_s29  ;;  %766 = vrot.lane.b32.xlu0 %v746_v26, %s2484_s29 }
 0x3cf   : > { %v721_v27 = vpop.permute.xlu1 %720  ;;  %v723_v28 = vpop.permute.xlu0 %722 }
 0x3d0   : > { %v747_v29 = vmul.f32 %v721_v27, %v699_v60  ;;  %v748_v30 = vmul.f32 %v723_v28, %v700_v61 }
 0x3d2   : > { %768 = vrot.lane.b32.xlu1 %v747_v29, %s2484_s29  ;;  %770 = vrot.lane.b32.xlu0 %v748_v30, %s2484_s29 }
 0x3d3   : > { %v725_v31 = vpop.permute.xlu1 %724  ;;  %v727_v32 = vpop.permute.xlu0 %726 }
 0x3d4   : > { %v749_v33 = vmul.f32 %v725_v31, %v701_v0  ;;  %v750_v34 = vmul.f32 %v727_v32, %v702_v1 }
 0x3d6   : > { %772 = vrot.lane.b32.xlu1 %v749_v33, %s2484_s29  ;;  %774 = vrot.lane.b32.xlu0 %v750_v34, %s2484_s29 }
 0x3d7   : > { %v729_v35 = vpop.permute.xlu1 %728  ;;  %v731_v36 = vpop.permute.xlu0 %730 }
 0x3d8   : > { %v751_v37 = vmul.f32 %v729_v35, %v703_v4  ;;  %v752_v38 = vmul.f32 %v731_v36, %v704_v5 }
 0x3da   : > { %776 = vrot.lane.b32.xlu1 %v751_v37, %s2484_s29  ;;  %778 = vrot.lane.b32.xlu0 %v752_v38, %s2484_s29 }
 0x3db   : > { %v733_v39 = vpop.permute.xlu1 %732  ;;  %v735_v40 = vpop.permute.xlu0 %734 }
 0x3dc   : > { %v753_v41 = vmul.f32 %v733_v39, %v705_v8  ;;  %v754_v42 = vmul.f32 %v735_v40, %v706_v9 }
 0x3de   : > { %780 = vrot.lane.b32.xlu1 %v753_v41, %s2484_s29  ;;  %782 = vrot.lane.b32.xlu0 %v754_v42, %s2484_s29 }
 0x3df   : > { %v737_v43 = vpop.permute.xlu1 %736  ;;  %v739_v44 = vpop.permute.xlu0 %738 }
 0x3e0   : > { %v755_v45 = vmul.f32 %v737_v43, %v707_v12  ;;  %v756_v46 = vmul.f32 %v739_v44, %v708_v13 }
 0x3e2   : > { %784 = vrot.lane.b32.xlu1 %v755_v45, %s2484_s29  ;;  %786 = vrot.lane.b32.xlu0 %v756_v46, %s2484_s29 }
 0x3e3   : > { %v741_v47 = vpop.permute.xlu1 %740 }
 0x3e4   : > { %v757_v48 = vmul.f32 %v741_v47, %v709_v15 }
 0x3e6   : > { %788 = vrot.lane.b32.xlu1 %v757_v48, %s2484_s29 }
 0x438   : > { %v759_v50 = vpop.permute.xlu0 %758 }
 0x439   : > { %v790_v51 = vmul.f32 %v759_v50, %v742_v17 }
 0x43b   : > { %806 = vrot.lane.b32.xlu0 %v790_v51, %s2486_s5 }
 0x43c   : > { %v761_v52 = vpop.permute.xlu1 %760  ;;  %v763_v53 = vpop.permute.xlu0 %762 }
 0x43d   : > { %v791_v54 = vmul.f32 %v761_v52, %v743_v20  ;;  %v792_v55 = vmul.f32 %v763_v53, %v744_v22  ;;  %v1753_v52 = vld [vmem:[%s2600_s9] sm:$0xff]  }
 0x43e   : > { %v1754_v53 = vunpack.c.l.bf16 %v1753_v52 }
 0x43f   : > { %808 = vrot.lane.b32.xlu1 %v791_v54, %s2486_s5  ;;  %810 = vrot.lane.b32.xlu0 %v792_v55, %s2486_s5 }
 0x440   : > { %v765_v56 = vpop.permute.xlu1 %764  ;;  %v767_v57 = vpop.permute.xlu0 %766 }
 0x441   : > { %v793_v58 = vmul.f32 %v765_v56, %v745_v25  ;;  %v794_v59 = vmul.f32 %v767_v57, %v746_v26  ;;  %v1755_v56 = vunpack.c.h.bf16 %v1753_v52  ;;  %v1784_v57 = vld [vmem:[%s2600_s9 + $0x8] sm:$0xff]  }
 0x443   : > { %812 = vrot.lane.b32.xlu1 %v793_v58, %s2486_s5  ;;  %814 = vrot.lane.b32.xlu0 %v794_v59, %s2486_s5 }
 0x444   : > { %v769_v60 = vpop.permute.xlu1 %768  ;;  %v771_v61 = vpop.permute.xlu0 %770 }
 0x445   : > { %v795_v62 = vmul.f32 %v769_v60, %v747_v29  ;;  %v796_v63 = vmul.f32 %v771_v61, %v748_v30 }
 0x447   : > { %816 = vrot.lane.b32.xlu1 %v795_v62, %s2486_s5  ;;  %818 = vrot.lane.b32.xlu0 %v796_v63, %s2486_s5 }
 0x448   : > { %v773_v0 = vpop.permute.xlu1 %772  ;;  %v775_v1 = vpop.permute.xlu0 %774 }
 0x449   : > { %v797_v2 = vmul.f32 %v773_v0, %v749_v33  ;;  %v798_v3 = vmul.f32 %v775_v1, %v750_v34  ;;  %v2487_v34 = vmov 0.0|0.0   ;;  %v1785_v0 = vld [vmem:[%s2600_s9 + $0x10] sm:$0xff]  }
 0x44a   : > { %2190 = vmatprep.subr.bf16.mxu0 %v2487_v34  ;;  %2214 = vmatprep.subr.bf16.mxu1 %v2487_v34 }
 0x44b   : > { %820 = vrot.lane.b32.xlu1 %v797_v2, %s2486_s5  ;;  %822 = vrot.lane.b32.xlu0 %v798_v3, %s2486_s5 }
 0x44c   : > { %v777_v4 = vpop.permute.xlu1 %776  ;;  %v779_v5 = vpop.permute.xlu0 %778 }
 0x44d   : > { %v799_v6 = vmul.f32 %v777_v4, %v751_v37  ;;  %v800_v7 = vmul.f32 %v779_v5, %v752_v38  ;;  %v1762_v4 = vunpack.c.l.bf16 %v1785_v0 }
 0x44f   : > { %824 = vrot.lane.b32.xlu1 %v799_v6, %s2486_s5  ;;  %826 = vrot.lane.b32.xlu0 %v800_v7, %s2486_s5 }
 0x450   : > { %v781_v8 = vpop.permute.xlu1 %780  ;;  %v783_v9 = vpop.permute.xlu0 %782 }
 0x451   : > { %v801_v10 = vmul.f32 %v781_v8, %v753_v41  ;;  %v802_v11 = vmul.f32 %v783_v9, %v754_v42 }
 0x453   : > { %828 = vrot.lane.b32.xlu1 %v801_v10, %s2486_s5  ;;  %830 = vrot.lane.b32.xlu0 %v802_v11, %s2486_s5 }
 0x454   : > { %v785_v12 = vpop.permute.xlu1 %784  ;;  %v787_v13 = vpop.permute.xlu0 %786 }
 0x455   : > { %v803_v14 = vmul.f32 %v785_v12, %v755_v45  ;;  %v804_v15 = vmul.f32 %v787_v13, %v756_v46  ;;  %v1763_v12 = vunpack.c.h.bf16 %v1785_v0 }
 0x457   : > { %832 = vrot.lane.b32.xlu1 %v803_v14, %s2486_s5  ;;  %834 = vrot.lane.b32.xlu0 %v804_v15, %s2486_s5 }
 0x458   : > { %v789_v16 = vpop.permute.xlu1 %788 }
 0x459   : > { %v805_v17 = vmul.f32 %v789_v16, %v757_v48 }
 0x45b   : > { %836 = vrot.lane.b32.xlu1 %v805_v17, %s2486_s5 }
 0x4ad   : > { %v807_v18 = vpop.permute.xlu0 %806 }
 0x4ae   : > { %v838_v19 = vmul.f32 %v807_v18, %v790_v51 }
 0x4b0   : > { %888 = vperm.xlu0 %2405, %v838_v19  }
 0x4b1   : > { %v809_v20 = vpop.permute.xlu1 %808  ;;  %v811_v22 = vpop.permute.xlu0 %810 }
 0x4b2   : > { %v839_v23 = vmul.f32 %v809_v20, %v791_v54  ;;  %v840_v26 = vmul.f32 %v811_v22, %v792_v55 }
 0x4b4   : > { %893 = vperm.xlu1 %2406, %v839_v23   ;;  %v2983_v23 = vld [vmem:[%s2600_s9 + $0x28] sm:$0xff]  }
 0x4b5   : > { %v813_v24 = vpop.permute.xlu1 %812  ;;  %v815_v25 = vpop.permute.xlu0 %814 }
 0x4b6   : > { %v841_v27 = vmul.f32 %v813_v24, %v793_v58  ;;  %v842_v30 = vmul.f32 %v815_v25, %v794_v59 }
 0x4b8   : > { %903 = vperm.xlu0 %2405, %v841_v27   ;;  %898 = vperm.xlu1 %2406, %v840_v26  }
 0x4b9   : > { %v817_v28 = vpop.permute.xlu1 %816  ;;  %v819_v29 = vpop.permute.xlu0 %818 }
 0x4ba   : > { %v843_v31 = vmul.f32 %v817_v28, %v795_v62  ;;  %v844_v35 = vmul.f32 %v819_v29, %v796_v63  ;;  %v1758_v62 = vunpack.c.l.bf16 %v1784_v57  ;;  %v1759_v63 = vunpack.c.h.bf16 %v1784_v57 }
 0x4bc   : > { %913 = vperm.xlu0 %2405, %v843_v31   ;;  %908 = vperm.xlu1 %2406, %v842_v30  }
 0x4bd   : > { %v821_v32 = vpop.permute.xlu1 %820  ;;  %v823_v33 = vpop.permute.xlu0 %822 }
 0x4be   : > { %v845_v36 = vmul.f32 %v821_v32, %v797_v2  ;;  %v846_v39 = vmul.f32 %v823_v33, %v798_v3 }
 0x4c0   : > { %923 = vperm.xlu0 %2405, %v845_v36   ;;  %918 = vperm.xlu1 %2406, %v844_v35   ;;  %v1774_v36 = vunpack.c.l.bf16 %v2983_v23 }
 0x4c1   : > { %v825_v37 = vpop.permute.xlu1 %824  ;;  %v827_v38 = vpop.permute.xlu0 %826 }
 0x4c2   : > { %v847_v40 = vmul.f32 %v825_v37, %v799_v6  ;;  %v848_v43 = vmul.f32 %v827_v38, %v800_v7 }
 0x4c4   : > { %933 = vperm.xlu0 %2405, %v847_v40   ;;  %928 = vperm.xlu1 %2406, %v846_v39  }
 0x4c5   : > { %v829_v41 = vpop.permute.xlu1 %828  ;;  %v831_v42 = vpop.permute.xlu0 %830 }
 0x4c6   : > { %v849_v44 = vmul.f32 %v829_v41, %v801_v10  ;;  %v850_v46 = vmul.f32 %v831_v42, %v802_v11  ;;  %v1786_v10 = vld [vmem:[%s2600_s9 + $0x18] sm:$0xff]   ;;  %v1787_v11 = vld [vmem:[%s2600_s9 + $0x20] sm:$0xff]   ;;  %v1775_v42 = vunpack.c.h.bf16 %v2983_v23 }
 0x4c7   : > { %v1766_v18 = vunpack.c.l.bf16 %v1786_v10  ;;  %v1767_v19 = vunpack.c.h.bf16 %v1786_v10  ;;  %v1770_v22 = vunpack.c.l.bf16 %v1787_v11  ;;  %v1771_v30 = vunpack.c.h.bf16 %v1787_v11 }
 0x4c8   : > { %943 = vperm.xlu0 %2405, %v849_v44   ;;  %938 = vperm.xlu1 %2406, %v848_v43  }
 0x4c9   : > { %v833_v45 = vpop.permute.xlu1 %832  ;;  %v835_v48 = vpop.permute.xlu0 %834 }
 0x4ca   : > { %v851_v47 = vmul.f32 %v833_v45, %v803_v14  ;;  %v852_v50 = vmul.f32 %v835_v48, %v804_v15 }
 0x4cc   : > { %953 = vperm.xlu0 %2405, %v851_v47   ;;  %948 = vperm.xlu1 %2406, %v850_v46   ;;  %v3004_v47 = vld [vmem:[%s2600_s9 + $0x30] sm:$0xff]  }
 0x4cd   : > { %v837_v49 = vpop.permute.xlu1 %836 }
 0x4ce   : > { %v853_v51 = vmul.f32 %v837_v49, %v805_v17 }
 0x4d0   : > { %963 = vperm.xlu0 %2405, %v853_v51   ;;  %958 = vperm.xlu1 %2406, %v852_v50  }
 0x52f   : > { %v889_v54 = vpop.permute.xlu0 %888 }
 0x530   : > { %v966_v55 = vmul.f32 %v1754_v53, %v889_v54 }
 0x532   : > { %v983_v58 = vand.u32 4294901760, %v966_v55 }
 0x533   : > { %v894_v59 = vpop.permute.xlu1 %893 }
 0x534   : > { %v2968_v60 = vsub.f32 %v966_v55, %v983_v58  ;;  %v967_v61 = vmul.f32 %v1755_v56, %v894_v59 }
 0x536   : > { %v986_v1 = vand.u32 4294901760, %v967_v61  ;;  %v1071_v5 = vand.u32 4294901760, %v2968_v60 }
 0x537   : > { %v899_v2 = vpop.permute.xlu1 %898  ;;  %v904_v3 = vpop.permute.xlu0 %903 }
 0x538   : > { %v2972_v6 = vpack.c.bf16 %v986_v1, %v983_v58  ;;  %v2974_v7 = vsub.f32 %v967_v61, %v986_v1  ;;  %v968_v8 = vmul.f32 %v1758_v62, %v899_v2  ;;  %v969_v9 = vmul.f32 %v1759_v63, %v904_v3 }
 0x539   : > { %v1072_v20 = vsub.f32 %v2968_v60, %v1071_v5  ;;  %v1778_v61 = vunpack.c.l.bf16 %v3004_v47 }
 0x53a   : > { %v989_v13 = vand.u32 4294901760, %v968_v8  ;;  %v992_v14 = vand.u32 4294901760, %v969_v9  ;;  %2192 = vmatpush3.bf16.msra.mxu0 %v2972_v6  ;;  %v1078_v15 = vand.u32 4294901760, %v2974_v7 }
 0x53b   : > { %v909_v16 = vpop.permute.xlu1 %908  ;;  %v914_v17 = vpop.permute.xlu0 %913  ;;  %2193 = vmatprep.subr.bf16.mxu0 %v2487_v34  ;;  %v1073_v40 = vand.u32 4294901760, %v1072_v20 }
 0x53c   : > { %v2985_v24 = vsub.f32 %v968_v8, %v989_v13  ;;  %v2987_v25 = vpack.c.bf16 %v992_v14, %v989_v13  ;;  %v2989_v26 = vsub.f32 %v969_v9, %v992_v14  ;;  %v970_v27 = vmul.f32 %v1762_v4, %v909_v16  ;;  %v1790_v9 = vld [vmem:[%s2600_s9 + $0x38] sm:$0xff]  }
 0x53d   : > { %v971_v28 = vmul.f32 %v1763_v12, %v914_v17  ;;  %v1079_v29 = vsub.f32 %v2974_v7, %v1078_v15  ;;  %v2992_v31 = vpack.c.bf16 %v1078_v15, %v1071_v5  ;;  %v1779_v13 = vunpack.c.h.bf16 %v3004_v47 }
 0x53e   : > { %v1085_v32 = vand.u32 4294901760, %v2985_v24  ;;  %v1092_v33 = vand.u32 4294901760, %v2989_v26  ;;  %v995_v35 = vand.u32 4294901760, %v970_v27  ;;  %2195 = vmatpush3.bf16.msra.mxu0 %v2987_v25 }
 0x53f   : > { %v998_v37 = vand.u32 4294901760, %v971_v28  ;;  %v919_v38 = vpop.permute.xlu1 %918  ;;  %v924_v39 = vpop.permute.xlu0 %923  ;;  %2196 = vmatprep.subr.bf16.mxu0 %v2487_v34  ;;  %v1080_v41 = vand.u32 4294901760, %v1079_v29 }
 0x540   : > { %v3000_v43 = vsub.f32 %v970_v27, %v995_v35  ;;  %v972_v44 = vmul.f32 %v1766_v18, %v919_v38  ;;  %v973_v45 = vmul.f32 %v1767_v19, %v924_v39  ;;  %v1086_v46 = vsub.f32 %v2985_v24, %v1085_v32 }
 0x541   : > { %v3006_v48 = vpack.c.bf16 %v998_v37, %v995_v35  ;;  %v3008_v49 = vsub.f32 %v971_v28, %v998_v37  ;;  %v2215_v50 = vpack.c.bf16 %v1080_v41, %v1073_v40  ;;  %v1093_v51 = vsub.f32 %v2989_v26, %v1092_v33 }
 0x542   : > { %v1099_v52 = vand.u32 4294901760, %v3000_v43  ;;  %v1001_v53 = vand.u32 4294901760, %v972_v44  ;;  %v1004_v54 = vand.u32 4294901760, %v973_v45  ;;  %v1087_v55 = vand.u32 4294901760, %v1086_v46 }
 0x543   : > { %v1106_v56 = vand.u32 4294901760, %v3008_v49  ;;  %2198 = vmatpush3.bf16.msra.mxu0 %v3006_v48  ;;  %2216 = vmatpush3.bf16.msra.mxu1 %v2215_v50  ;;  %v929_v57 = vpop.permute.xlu1 %928  ;;  %v934_v58 = vpop.permute.xlu0 %933  ;;  %v1094_v59 = vand.u32 4294901760, %v1093_v51  ;;  %v3015_v62 = vpack.c.bf16 %v1092_v33, %v1085_v32  ;;  %v1782_v27 = vunpack.c.l.bf16 %v1790_v9 }
 0x544   : > { %v3017_v63 = vsub.f32 %v972_v44, %v1001_v53  ;;  %v3019_v0 = vpack.c.bf16 %v1004_v54, %v1001_v53  ;;  %v3021_v1 = vsub.f32 %v973_v45, %v1004_v54  ;;  %v974_v2 = vmul.f32 %v1770_v22, %v929_v57  ;;  %2199 = vmatprep.subr.bf16.mxu0 %v2487_v34 }
 0x545   : > { %v975_v3 = vmul.f32 %v1771_v30, %v934_v58  ;;  %2217 = vmatprep.subr.bf16.mxu1 %v2487_v34  ;;  %v2218_v4 = vpack.c.bf16 %v1094_v59, %v1087_v55  ;;  %v1100_v5 = vsub.f32 %v3000_v43, %v1099_v52  ;;  %v1107_v8 = vsub.f32 %v3008_v49, %v1106_v56 }
 0x546   : > { %v1113_v10 = vand.u32 4294901760, %v3017_v63  ;;  %v1120_v11 = vand.u32 4294901760, %v3021_v1  ;;  %v1007_v12 = vand.u32 4294901760, %v974_v2  ;;  %v3032_v19 = vpack.c.bf16 %v1106_v56, %v1099_v52 }
 0x547   : > { %v1010_v14 = vand.u32 4294901760, %v975_v3  ;;  %2201 = vmatpush3.bf16.msra.mxu0 %v3019_v0  ;;  %2219 = vmatpush3.bf16.msra.mxu1 %v2218_v4  ;;  %v939_v15 = vpop.permute.xlu1 %938  ;;  %v944_v16 = vpop.permute.xlu0 %943  ;;  %v1101_v17 = vand.u32 4294901760, %v1100_v5  ;;  %v1108_v18 = vand.u32 4294901760, %v1107_v8 }
 0x548   : > { %v3034_v20 = vsub.f32 %v974_v2, %v1007_v12  ;;  %v976_v22 = vmul.f32 %v1774_v36, %v939_v15  ;;  %v977_v23 = vmul.f32 %v1775_v42, %v944_v16  ;;  %2202 = vmatprep.subr.bf16.mxu0 %v2487_v34  ;;  %2220 = vmatprep.subr.bf16.mxu1 %v2487_v34  ;;  %v1783_v42 = vunpack.c.h.bf16 %v1790_v9 }
 0x549   : > { %v3038_v28 = vpack.c.bf16 %v1010_v14, %v1007_v12  ;;  %v3040_v29 = vsub.f32 %v975_v3, %v1010_v14  ;;  %v2221_v30 = vpack.c.bf16 %v1108_v18, %v1101_v17  ;;  %v1114_v32 = vsub.f32 %v3017_v63, %v1113_v10 }
 0x54a   : > { %v1127_v33 = vand.u32 4294901760, %v3034_v20  ;;  %v1013_v35 = vand.u32 4294901760, %v976_v22  ;;  %v1016_v37 = vand.u32 4294901760, %v977_v23  ;;  %v1121_v38 = vsub.f32 %v3021_v1, %v1120_v11 }
 0x54b   : > { %v1134_v36 = vand.u32 4294901760, %v3040_v29  ;;  %2204 = vmatpush3.bf16.msra.mxu0 %v3038_v28  ;;  %2222 = vmatpush3.bf16.msra.mxu1 %v2221_v30  ;;  %v949_v39 = vpop.permute.xlu1 %948  ;;  %v954_v40 = vpop.permute.xlu0 %953  ;;  %v1115_v41 = vand.u32 4294901760, %v1114_v32  ;;  %v3047_v44 = vpack.c.bf16 %v1120_v11, %v1113_v10 }
 0x54c   : > { %v3049_v45 = vsub.f32 %v976_v22, %v1013_v35  ;;  %v3051_v46 = vpack.c.bf16 %v1016_v37, %v1013_v35  ;;  %v3053_v47 = vsub.f32 %v977_v23, %v1016_v37  ;;  %v978_v50 = vmul.f32 %v1778_v61, %v949_v39  ;;  %2205 = vmatprep.subr.bf16.mxu0 %v2487_v34 }
 0x54d   : > { %v979_v51 = vmul.f32 %v1779_v13, %v954_v40  ;;  %2223 = vmatprep.subr.bf16.mxu1 %v2487_v34  ;;  %v1122_v52 = vand.u32 4294901760, %v1121_v38  ;;  %v1128_v53 = vsub.f32 %v3034_v20, %v1127_v33  ;;  %v1135_v54 = vsub.f32 %v3040_v29, %v1134_v36 }
 0x54e   : > { %v1141_v55 = vand.u32 4294901760, %v3049_v45  ;;  %v1148_v56 = vand.u32 4294901760, %v3053_v47  ;;  %v1019_v57 = vand.u32 4294901760, %v978_v50 }
 0x54f   : > { %v1022_v58 = vand.u32 4294901760, %v979_v51  ;;  %2207 = vmatpush3.bf16.msra.mxu0 %v3051_v46  ;;  %v2224_v59 = vpack.c.bf16 %v1122_v52, %v1115_v41  ;;  %v959_v61 = vpop.permute.xlu1 %958  ;;  %v964_v2 = vpop.permute.xlu0 %963  ;;  %v1129_v3 = vand.u32 4294901760, %v1128_v53  ;;  %v1136_v4 = vand.u32 4294901760, %v1135_v54 }
 0x550   : > { %v3062_v5 = vsub.f32 %v978_v50, %v1019_v57  ;;  %v980_v8 = vmul.f32 %v1782_v27, %v959_v61  ;;  %v981_v9 = vmul.f32 %v1783_v42, %v964_v2  ;;  %2208 = vmatprep.subr.bf16.mxu0 %v2487_v34  ;;  %v1142_v10 = vsub.f32 %v3049_v45, %v1141_v55 }
 0x551   : > { %v3066_v11 = vpack.c.bf16 %v1022_v58, %v1019_v57  ;;  %v3068_v12 = vsub.f32 %v979_v51, %v1022_v58  ;;  %2225 = vmatpush3.bf16.msra.mxu1 %v2224_v59  ;;  %v2227_v13 = vpack.c.bf16 %v1136_v4, %v1129_v3  ;;  %v1149_v14 = vsub.f32 %v3053_v47, %v1148_v56 }
 0x552   : > { %v1155_v15 = vand.u32 4294901760, %v3062_v5  ;;  %v1025_v16 = vand.u32 4294901760, %v980_v8  ;;  %v1028_v17 = vand.u32 4294901760, %v981_v9  ;;  %2226 = vmatprep.subr.bf16.mxu1 %v2487_v34  ;;  %v1143_v18 = vand.u32 4294901760, %v1142_v10 }
 0x553   : > { %v1162_v22 = vand.u32 4294901760, %v3068_v12  ;;  %2210 = vmatpush3.bf16.msra.mxu0 %v3066_v11  ;;  %v1150_v23 = vand.u32 4294901760, %v1149_v14  ;;  %v3075_v27 = vpack.c.bf16 %v1134_v36, %v1127_v33  ;;  %v3082_v40 = vpack.c.bf16 %v1148_v56, %v1141_v55 }
 0x554   : > { %v1168_v30 = vsub.f32 %v980_v8, %v1025_v16  ;;  %v3077_v32 = vpack.c.bf16 %v1028_v17, %v1025_v16  ;;  %v1175_v35 = vsub.f32 %v981_v9, %v1028_v17  ;;  %2211 = vmatprep.subr.bf16.mxu0 %v2487_v34  ;;  %v1156_v37 = vsub.f32 %v3062_v5, %v1155_v15 }
 0x555   : > { %2228 = vmatpush3.bf16.msra.mxu1 %v2227_v13  ;;  %v2230_v38 = vpack.c.bf16 %v1150_v23, %v1143_v18  ;;  %v1163_v39 = vsub.f32 %v3068_v12, %v1162_v22  ;;  %v3084_v41 = vpack.c.bf16 %v1162_v22, %v1155_v15  ;;  %v2239_v58 = vpack.c.bf16 %v2974_v7, %v2968_v60 }
 0x556   : > { %v1169_v42 = vand.u32 4294901760, %v1168_v30  ;;  %v1176_v50 = vand.u32 4294901760, %v1175_v35  ;;  %2229 = vmatprep.subr.bf16.mxu1 %v2487_v34  ;;  %v1157_v33 = vand.u32 4294901760, %v1156_v37  ;;  %v2488_v59 = vmov 1.0  }
 0x557   : > { %2213 = vmatpush3.bf16.msra.mxu0 %v3077_v32  ;;  %v1164_v36 = vand.u32 4294901760, %v1163_v39  ;;  %v2242_v61 = vpack.c.bf16 %v2989_v26, %v2985_v24  ;;  %v2245_v2 = vpack.c.bf16 %v3008_v49, %v3000_v43  ;;  %v2248_v60 = vpack.c.bf16 %v3021_v1, %v3017_v63 }
 0x558   : > { %v1170_v51 = vsub.f32 %v1168_v30, %v1169_v42  ;;  %v1177_v52 = vsub.f32 %v1175_v35, %v1176_v50  ;;  %v3088_v53 = vpack.c.bf16 %v1176_v50, %v1169_v42  ;;  %v2251_v7 = vpack.c.bf16 %v3040_v29, %v3034_v20 }
 0x559   : > { %2231 = vmatpush3.bf16.msra.mxu1 %v2230_v38  ;;  %v2233_v54 = vpack.c.bf16 %v1164_v36, %v1157_v33  ;;  %v2254_v24 = vpack.c.bf16 %v3053_v47, %v3049_v45  ;;  %v2257_v26 = vpack.c.bf16 %v3068_v12, %v3062_v5  ;;  %v2260_v43 = vpack.c.bf16 %v1175_v35, %v1168_v30 }
 0x55a   : > { %2232 = vmatprep.subr.bf16.mxu1 %v2487_v34  ;;  %v1171_v55 = vand.u32 4294901760, %v1170_v51  ;;  %v1178_v56 = vand.u32 4294901760, %v1177_v52  ;;  %2013 = vmatmul.mubr.f32.vlgmr.msra.gmra.mrb[4].mxu0 %v2476_v21 }
 0x55c   : > { %v2236_v57 = vpack.c.bf16 %v1178_v56, %v1171_v55 }
 0x55d   : > { %2234 = vmatpush3.bf16.msra.mxu1 %v2233_v54 }
 0x55e   : > { %2235 = vmatprep.subr.bf16.mxu1 %v2487_v34 }
 0x561   : > { %2237 = vmatpush3.bf16.msra.mxu1 %v2236_v57 }
 0x562   : > { %2238 = vmatprep.subr.bf16.mxu1 %v2487_v34 }
 0x564   : > { %2048 = vmatmul.mubr.f32.vlgmr.msra.gmra.mrb[0].mxu1 %v2488_v59 }
 0x565   : > { %2240 = vmatpush3.bf16.msra.mxu1 %v2239_v58  ;;  %2082 = vmatprep.mubr.msk.f32.mxu1 %vm2477_vm2, %v2476_v21 }
 0x566   : > { %2241 = vmatprep.subr.bf16.mxu1 %v2487_v34 }
 0x569   : > { %2243 = vmatpush3.bf16.msra.mxu1 %v2242_v61 }
 0x56a   : > { %2244 = vmatprep.subr.bf16.mxu1 %v2487_v34 }
 0x56d   : > { %2246 = vmatpush3.bf16.msra.mxu1 %v2245_v2 }
 0x56e   : > { %2247 = vmatprep.subr.bf16.mxu1 %v2487_v34 }
 0x571   : > { %2249 = vmatpush3.bf16.msra.mxu1 %v2248_v60 }
 0x572   : > { %2250 = vmatprep.subr.bf16.mxu1 %v2487_v34 }
 0x575   : > { %2252 = vmatpush3.bf16.msra.mxu1 %v2251_v7 }
 0x576   : > { %2253 = vmatprep.subr.bf16.mxu1 %v2487_v34 }
 0x579   : > { %2255 = vmatpush3.bf16.msra.mxu1 %v2254_v24 }
 0x57a   : > { %2256 = vmatprep.subr.bf16.mxu1 %v2487_v34 }
 0x57d   : > { %2258 = vmatpush3.bf16.msra.mxu1 %v2257_v26 }
 0x57e   : > { %2259 = vmatprep.subr.bf16.mxu1 %v2487_v34 }
 0x581   : > { %2261 = vmatpush3.bf16.msra.mxu1 %v2260_v43 }
 0x582   : > { %2262 = vmatprep.subr.bf16.mxu1 %v2487_v34 }
 0x584   : > { %2083 = vmatmul.mubr.f32.vlgmr.msra.gmra.mrb[0].mxu1 %v2476_v21 }
 0x585   : > { %2264 = vmatpush3.bf16.msra.mxu1 %v2972_v6  ;;  %2117 = vmatprep.mubr.msk.f32.mxu1 %vm2477_vm2, %v2476_v21 }
 0x586   : > { %2265 = vmatprep.subr.bf16.mxu1 %v2487_v34 }
 0x589   : > { %2267 = vmatpush3.bf16.msra.mxu1 %v2987_v25 }
 0x58a   : > { %2268 = vmatprep.subr.bf16.mxu1 %v2487_v34 }
 0x58d   : > { %2270 = vmatpush3.bf16.msra.mxu1 %v3006_v48 }
 0x58e   : > { %2271 = vmatprep.subr.bf16.mxu1 %v2487_v34 }
 0x591   : > { %2273 = vmatpush3.bf16.msra.mxu1 %v3019_v0 }
 0x592   : > { %2274 = vmatprep.subr.bf16.mxu1 %v2487_v34 }
 0x595   : > { %2276 = vmatpush3.bf16.msra.mxu1 %v3038_v28 }
 0x596   : > { %2277 = vmatprep.subr.bf16.mxu1 %v2487_v34 }
 0x599   : > { %2279 = vmatpush3.bf16.msra.mxu1 %v3051_v46 }
 0x59a   : > { %2280 = vmatprep.subr.bf16.mxu1 %v2487_v34 }
 0x59d   : > { %2282 = vmatpush3.bf16.msra.mxu1 %v3066_v11 }
 0x59e   : > { %2283 = vmatprep.subr.bf16.mxu1 %v2487_v34 }
 0x5a1   : > { %2285 = vmatpush3.bf16.msra.mxu1 %v3077_v32 }
 0x5a2   : > { %2286 = vmatprep.subr.bf16.mxu1 %v2487_v34 }
 0x5a4   : > { %2118 = vmatmul.mubr.f32.vlgmr.msra.gmra.mrb[0].mxu1 %v2476_v21 }
 0x5a5   : > { %2288 = vmatpush3.bf16.msra.mxu1 %v2992_v31  ;;  %2152 = vmatprep.mubr.msk.f32.mxu1 %vm2477_vm2, %v2476_v21 }
 0x5a6   : > { %2289 = vmatprep.subr.bf16.mxu1 %v2487_v34 }
 0x5a9   : > { %2291 = vmatpush3.bf16.msra.mxu1 %v3015_v62 }
 0x5aa   : > { %2292 = vmatprep.subr.bf16.mxu1 %v2487_v34 }
 0x5ad   : > { %2294 = vmatpush3.bf16.msra.mxu1 %v3032_v19 }
 0x5ae   : > { %2295 = vmatprep.subr.bf16.mxu1 %v2487_v34 }
 0x5b1   : > { %2297 = vmatpush3.bf16.msra.mxu1 %v3047_v44 }
 0x5b2   : > { %2298 = vmatprep.subr.bf16.mxu1 %v2487_v34 }
 0x5b5   : > { %2300 = vmatpush3.bf16.msra.mxu1 %v3075_v27 }
 0x5b6   : > { %2301 = vmatprep.subr.bf16.mxu1 %v2487_v34 }
 0x5b9   : > { %2303 = vmatpush3.bf16.msra.mxu1 %v3082_v40 }
 0x5ba   : > { %2304 = vmatprep.subr.bf16.mxu1 %v2487_v34 }
 0x5bd   : > { %2306 = vmatpush3.bf16.msra.mxu1 %v3084_v41 }
 0x5be   : > { %2307 = vmatprep.subr.bf16.mxu1 %v2487_v34 }
 0x5c1   : > { %2309 = vmatpush3.bf16.msra.mxu1 %v3088_v53 }
 0x5c2   : > { %2310 = vmatprep.subr.bf16.mxu1 %v2487_v34 }
 0x5c4   : > { %2153 = vmatmul.mubr.f32.vlgmr.msra.gmra.mrb[0].mxu1 %v2488_v59 }
 0x5c5   : > { %2312 = vmatpush3.bf16.msra.mxu1 %v2972_v6  ;;  %2187 = vmatprep.mubr.msk.f32.mxu1 %vm2477_vm2, %v2476_v21 }
 0x5c6   : > { %2313 = vmatprep.subr.bf16.mxu1 %v2487_v34 }
 0x5c9   : > { %2315 = vmatpush3.bf16.msra.mxu1 %v2987_v25 }
 0x5ca   : > { %2316 = vmatprep.subr.bf16.mxu1 %v2487_v34 }
 0x5cd   : > { %2318 = vmatpush3.bf16.msra.mxu1 %v3006_v48 }
 0x5ce   : > { %2319 = vmatprep.subr.bf16.mxu1 %v2487_v34 }
 0x5d1   : > { %2321 = vmatpush3.bf16.msra.mxu1 %v3019_v0 }
 0x5d2   : > { %2322 = vmatprep.subr.bf16.mxu1 %v2487_v34 }
 0x5d5   : > { %2324 = vmatpush3.bf16.msra.mxu1 %v3038_v28 }
 0x5d6   : > { %2325 = vmatprep.subr.bf16.mxu1 %v2487_v34 }
 0x5d9   : > { %2327 = vmatpush3.bf16.msra.mxu1 %v3051_v46 }
 0x5da   : > { %2328 = vmatprep.subr.bf16.mxu1 %v2487_v34 }
 0x5dd   : > { %2330 = vmatpush3.bf16.msra.mxu1 %v3066_v11 }
 0x5de   : > { %2331 = vmatprep.subr.bf16.mxu1 %v2487_v34 }
 0x5e1   : > { %2333 = vmatpush3.bf16.msra.mxu1 %v3077_v32 }
 0x5e4   : > { %2188 = vmatmul.mubr.f32.vlgmr.msra.gmra.mrb[0].mxu1 %v2488_v59 }
 0x62d   : > { %v1064_v21 = vpop.f32.mrb[4].mxu0 }
 0x62e   : > { %v2014_v6 = vpop.f32.mrb[5].mxu0 }
 0x6b4   : > { %1614 = sbr.rel (%p1748_p7) target bundleno = 1723 (0x6bb), region = 48 }
 0x6b7   : > { %v1606_v25 = vpop.f32.mrb[0].mxu1 }
 0x6b8   : > { %v2334_v31 = vadd.f32 %v1606_v25, %v1064_v21  ;;  %v2189_v48 = vpop.f32.mrb[1].mxu1 }
 0x6ba   : > { %1610 = vst [vmem:[#allocation2] sm:$0x1] %v2334_v31  ;;  %1615 = vst [vmem:[%s3197_s4] sm:$0x1] (!%p1748_p7), %v2334_v31 }
 0x6bb PF: > { %p14_p4 = scmp.ge.s32.totalorder %s2536_s20, 4   ;;  %s3217_s15 = smov %s2463_s16 }
 0x6bc   : > { %s3218_s16 = smov %s2467_s17  ;;  %s3219_s17 = smov %s2546_s23 }
 0x6bd   : > { %s3220_s18 = smov %s2536_s20  ;;  %16 = sbr.rel (!%p14_p4) target bundleno = 3 (0x3), region = 86 }
 0x6c4   :  { %1627 = vsyncpa [#allocation5], 1 }
 0x6c5   :  { %1629 = vsyncpa [#allocation5 + $0x1], 1 }

</bundles_post_ra>
